<compile_context>
chip_gen: v5e
topology: v5e:2x2
jax: 0.10.0
libtpu: 0.0.40
codegen_flags: <defaults>
</compile_context>

<pallas_src>
import functools

import jax
import jax.numpy as jnp
import numpy as np
from jax import lax
from jax.experimental import pallas as pl
from jax.experimental.pallas import tpu as pltpu

_LANES = 128


def _elu(x):
    # F.elu with alpha=1.0
    return jnp.where(x > 0, x, jnp.exp(jnp.minimum(x, 0.0)) - 1.0)


def _round8(n):
    return ((n + 7) // 8) * 8


def _slab_layout(C, E, PE, H, Z):
    """Row offsets (all multiples of 8) of each segment in the packed
    (rows, 128) parameter slab.  Shared by pack_params and the kernel."""
    offs = {}
    r = 0

    def add(name, rows):
        nonlocal r
        offs[name] = r
        r += _round8(rows)

    add("w_emb", C)        # lanes 0:E   block-diag [action|reward|state] embedding
    add("w_p", 2 * Z)      # lanes 0:PE  prior embedding
    add("w3_h", H)         # lanes 0:16  enc3 (hidden part)
    add("w3_p", 2 * Z)     # lanes 0:16  enc3 (prior part)
    add("w4", 16)          # lanes 0:2Z  fused mu|logvar head
    add("wih_ars", E)      # lanes 0:3H  GRU input weight, a/r/s rows
    add("wih_p", PE)       # lanes 0:3H  GRU input weight, prior rows
    add("whh", H)          # lanes 0:3H  GRU hidden weight
    add("bias", 8)         # one bias segment per row (6 used), each at lane 0
    return offs, r


def _embed_infer_kernel(
    # inputs
    ctx_ref,      # (T*B, C)        time-major flattened context
    pe_ref,       # (8 + B, 2Z)     rows 0:B = prior, rows 8:8+B = [eps | 0]
    slab_ref,     # (R, 128)        packed parameter slab
    # outputs
    mulv_ref,     # (B, 2Z)         [mu | logvar]
    z_ref,        # (B, Z)
    *, action_dim, state_dim, z_dim,
    a_emb_dim, r_emb_dim, s_emb_dim, p_emb_dim,
    hidden, seq_len, batch,
):
    T, B, H, Z = seq_len, batch, hidden, z_dim
    C = action_dim + 1 + state_dim
    E = a_emb_dim + r_emb_dim + s_emb_dim
    PE = p_emb_dim
    H3 = 3 * H
    offs, _ = _slab_layout(C, E, PE, H, Z)
    eps_row = _round8(B)

    ctx = ctx_ref[...]
    prior = pe_ref[0:B, 0:2 * Z]
    eps = pe_ref[eps_row:eps_row + B, 0:Z]

    # --- aligned ref-slices of the slab (8-aligned row starts, lane 0) ---
    w_emb = slab_ref[offs["w_emb"]:offs["w_emb"] + C, 0:E]
    w_p = slab_ref[offs["w_p"]:offs["w_p"] + 2 * Z, 0:PE]
    w3_h = slab_ref[offs["w3_h"]:offs["w3_h"] + H, 0:16]
    w3_p = slab_ref[offs["w3_p"]:offs["w3_p"] + 2 * Z, 0:16]
    w4 = slab_ref[offs["w4"]:offs["w4"] + 16, 0:2 * Z]
    wih_ars = slab_ref[offs["wih_ars"]:offs["wih_ars"] + E, 0:H3]
    wih_p = slab_ref[offs["wih_p"]:offs["wih_p"] + PE, 0:H3]
    whh = slab_ref[offs["whh"]:offs["whh"] + H, 0:H3]

    rb = offs["bias"]
    bias_blk = slab_ref[rb:rb + 8, :]        # one (8,128) vreg; plain sublane reads
    b_emb = bias_blk[0:1, 0:E]
    b_p = bias_blk[1:2, 0:PE]
    b_ih = bias_blk[2:3, 0:H3]               # r/z hidden biases folded in
    bhh_n = bias_blk[3:4, 0:H]               # n-gate hidden bias (stays under r)
    b_3 = bias_blk[4:5, 0:16]                # trust * w3_trust folded in
    b_4 = bias_blk[5:6, 0:2 * Z]

    # --- embeddings: act|rew|state in one MXU op (block-diagonal weight) ---
    emb = _elu(jnp.dot(ctx, w_emb, preferred_element_type=jnp.float32) + b_emb)    # (T*B, E)
    p_emb = _elu(jnp.dot(prior, w_p, preferred_element_type=jnp.float32) + b_p)    # (B, PE)

    # --- GRU gate pre-activations ---
    gi_ars = jnp.dot(emb, wih_ars, preferred_element_type=jnp.float32)             # (T*B, 3H)
    gi_p = jnp.dot(p_emb, wih_p, preferred_element_type=jnp.float32) + b_ih        # (B, 3H)

    # Hoisted off the serial recurrence chain: per-step gate inputs, the
    # broadcast n-gate hidden bias, and the head's prior contribution.
    gi_steps = [gi_ars[t * B:(t + 1) * B, :] + gi_p for t in range(T)]
    bhh_n_b = jnp.broadcast_to(bhh_n, (B, H))
    head_p = jnp.dot(prior, w3_p, preferred_element_type=jnp.float32) + b_3        # (B, 16)

    # --- fully unrolled recurrence (T static); everything stays in vregs ---
    # TODO(synk): keep whh resident in the MXU across the 8 steps via
    # pltpu.matmul_push_rhs / matmul_acc_lhs / matmul_pop once validated
    # on-target; default jnp.dot re-pushes the (H,3H) RHS each step.
    h = jnp.zeros((B, H), jnp.float32)
    for t in range(T):
        gi_t = gi_steps[t]
        gh = jnp.dot(h, whh, preferred_element_type=jnp.float32)
        r = jax.nn.sigmoid(gi_t[:, 0:H] + gh[:, 0:H])
        zg = jax.nn.sigmoid(gi_t[:, H:2 * H] + gh[:, H:2 * H])
        n = jnp.tanh(gi_t[:, 2 * H:H3] + r * (gh[:, 2 * H:H3] + bhh_n_b))
        h = (1.0 - zg) * n + zg * h

    # --- head: trust folded into b_3, prior term hoisted above the loop ---
    t3 = _elu(jnp.dot(_elu(h), w3_h, preferred_element_type=jnp.float32) + head_p)
    mulv = jnp.dot(t3, w4, preferred_element_type=jnp.float32) + b_4               # (B, 2Z)

    mu = mulv[:, 0:Z]
    logvar = mulv[:, Z:2 * Z]
    z = mu + eps * jnp.exp(0.5 * logvar)

    mulv_ref[...] = mulv
    z_ref[...] = z


def pack_params(params, *, z_dim, action_dim, action_embedding_dim, state_dim,
                state_embedding_dim, reward_embedding_dim, prior_embedding_dim,
                hidden, seq_len):
    """Wrapper-side restructuring into ONE sublane/lane-aligned parameter slab:
    block-diagonal embedding weight, split GRU input weight, folded biases,
    folded trust, fused mu/logvar head, one bias segment per slab row."""
    ae, re_, se, pe = (action_embedding_dim, reward_embedding_dim,
                       state_embedding_dim, prior_embedding_dim)
    C = action_dim + 1 + state_dim
    E = ae + re_ + se
    H = hidden
    Z = z_dim

    # TODO(synk): widen the slab to multiple 128-lane blocks if 3*hidden > 128.
    assert 3 * H <= _LANES and E <= _LANES and 2 * Z <= _LANES and pe <= _LANES

    offs, total_rows = _slab_layout(C, E, pe, H, Z)
    slab = jnp.zeros((total_rows, _LANES), jnp.float32)

    # Block-diagonal embedding weight; output columns ordered [action|reward|state]
    # to match the GRU input-feature order.
    w_emb = jnp.zeros((C, E), jnp.float32)
    w_emb = w_emb.at[0:action_dim, 0:ae].set(params["wa"])
    w_emb = w_emb.at[action_dim:action_dim + 1, ae:ae + re_].set(params["wr"])
    w_emb = w_emb.at[action_dim + 1:C, ae + re_:E].set(params["ws"])
    slab = slab.at[offs["w_emb"]:offs["w_emb"] + C, 0:E].set(w_emb)

    slab = slab.at[offs["w_p"]:offs["w_p"] + 2 * Z, 0:pe].set(params["wp"])

    # enc3 split: hidden part / prior part / trust row (folded into bias below).
    w3 = params["w3"]
    slab = slab.at[offs["w3_h"]:offs["w3_h"] + H, 0:16].set(w3[0:H, :])
    slab = slab.at[offs["w3_p"]:offs["w3_p"] + 2 * Z, 0:16].set(w3[H:H + 2 * Z, :])

    # Fused mu/logvar head.
    w4 = jnp.concatenate([params["w41"], params["w42"]], axis=1)       # (16, 2Z)
    slab = slab.at[offs["w4"]:offs["w4"] + 16, 0:2 * Z].set(w4)

    # GRU input weight split into a/r/s rows and prior rows; hidden weight.
    wih = params["wih"]
    slab = slab.at[offs["wih_ars"]:offs["wih_ars"] + E, 0:3 * H].set(wih[0:E, :])
    slab = slab.at[offs["wih_p"]:offs["wih_p"] + pe, 0:3 * H].set(wih[E:E + pe, :])
    slab = slab.at[offs["whh"]:offs["whh"] + H, 0:3 * H].set(params["whh"])

    # Biases: one segment per row, each starting at lane 0.
    b_emb = jnp.concatenate([params["ba"], params["br"], params["bs"]], axis=1)
    bih, bhh = params["bih"], params["bhh"]
    b_ih_folded = jnp.concatenate(
        [bih[:, 0:2 * H] + bhh[:, 0:2 * H], bih[:, 2 * H:3 * H]], axis=1)
    bhh_n = bhh[:, 2 * H:3 * H]
    w3_trust = w3[H + 2 * Z:H + 2 * Z + 1, :]
    b3_folded = params["b3"] + (1.0 / float(seq_len)) * w3_trust
    b4 = jnp.concatenate([params["b41"], params["b42"]], axis=1)

    rb = offs["bias"]
    slab = slab.at[rb + 0, 0:E].set(b_emb[0])
    slab = slab.at[rb + 1, 0:pe].set(params["bp"][0])
    slab = slab.at[rb + 2, 0:3 * H].set(b_ih_folded[0])
    slab = slab.at[rb + 3, 0:H].set(bhh_n[0])
    slab = slab.at[rb + 4, 0:16].set(b3_folded[0])
    slab = slab.at[rb + 5, 0:2 * Z].set(b4[0])

    return {"slab": slab, "seq_len": seq_len}


def embedding_inference_forward(context, prior, eps, packed, *,
                                z_dim, action_dim, state_dim,
                                action_embedding_dim, state_embedding_dim,
                                reward_embedding_dim, prior_embedding_dim,
                                hidden):
    """context: (B, T, action_dim + 1 + state_dim), prior: (B, 2*z_dim),
    eps: (B, z_dim), packed: output of pack_params (with seq_len == T).
    Returns (z, mu, logvar), each (B, z_dim)."""
    B, T, C = context.shape
    assert C == action_dim + 1 + state_dim
    # trust = 1/seq_len is folded into b_3 at pack time.
    assert T == packed["seq_len"], "runtime T must match the packed seq_len"

    # glue: time-major flatten so the kernel stays purely 2-D
    ctx_flat = jnp.transpose(context, (1, 0, 2)).reshape(T * B, C)

    # one sublane-aligned [prior ; eps] buffer -> one DMA, aligned ref-slices
    eps_row = _round8(B)
    pe = jnp.zeros((eps_row + B, 2 * z_dim), jnp.float32)
    pe = pe.at[0:B, :].set(prior)
    pe = pe.at[eps_row:eps_row + B, 0:z_dim].set(eps)

    kernel = functools.partial(
        _embed_infer_kernel,
        action_dim=action_dim, state_dim=state_dim, z_dim=z_dim,
        a_emb_dim=action_embedding_dim, r_emb_dim=reward_embedding_dim,
        s_emb_dim=state_embedding_dim, p_emb_dim=prior_embedding_dim,
        hidden=hidden, seq_len=T, batch=B,
    )

    vmem = pl.BlockSpec(memory_space=pltpu.MemorySpace.VMEM)
    # TODO(synk): for large real-world B on v7x, add a batch-parallel grid
    # (dimension_semantics=("parallel",)) so both TensorCores are used; the
    # toy B=2 call stays gridless on one core.
    mulv, z = pl.pallas_call(
        kernel,
        out_shape=(jax.ShapeDtypeStruct((B, 2 * z_dim), jnp.float32),
                   jax.ShapeDtypeStruct((B, z_dim), jnp.float32)),
        in_specs=[vmem, vmem, vmem],
        out_specs=(vmem, vmem),
    )(ctx_flat, pe, packed["slab"])

    mu = mulv[:, 0:z_dim]
    logvar = mulv[:, z_dim:2 * z_dim]
    return z, mu, logvar


def init_params(key, *, z_dim, action_dim, action_embedding_dim, state_dim,
                state_embedding_dim, reward_embedding_dim,
                prior_embedding_dim, hidden):
    """Deterministic PyTorch-style uniform init.  Weights stored (in, out)."""
    def linear(k, fan_in, fan_out):
        k1, k2 = jax.random.split(k)
        bound = 1.0 / np.sqrt(fan_in)
        w = jax.random.uniform(k1, (fan_in, fan_out), jnp.float32, -bound, bound)
        b = jax.random.uniform(k2, (1, fan_out), jnp.float32, -bound, bound)
        return w, b

    keys = jax.random.split(key, 9)
    n_in = action_embedding_dim + state_embedding_dim + reward_embedding_dim + prior_embedding_dim
    p = {}
    p["wa"], p["ba"] = linear(keys[0], action_dim, action_embedding_dim)
    p["ws"], p["bs"] = linear(keys[1], state_dim, state_embedding_dim)
    p["wr"], p["br"] = linear(keys[2], 1, reward_embedding_dim)
    p["wp"], p["bp"] = linear(keys[3], 2 * z_dim, prior_embedding_dim)
    # GRU params: PyTorch init uses bound 1/sqrt(hidden) for all of them.
    bound = 1.0 / np.sqrt(hidden)
    k_ih, k_bih, k_hh, k_bhh = jax.random.split(keys[4], 4)
    p["wih"] = jax.random.uniform(k_ih, (n_in, 3 * hidden), jnp.float32, -bound, bound)
    p["bih"] = jax.random.uniform(k_bih, (1, 3 * hidden), jnp.float32, -bound, bound)
    p["whh"] = jax.random.uniform(k_hh, (hidden, 3 * hidden), jnp.float32, -bound, bound)
    p["bhh"] = jax.random.uniform(k_bhh, (1, 3 * hidden), jnp.float32, -bound, bound)
    p["w3"], p["b3"] = linear(keys[5], hidden + 1 + 2 * z_dim, 16)
    p["w41"], p["b41"] = linear(keys[6], 16, z_dim)
    p["w42"], p["b42"] = linear(keys[7], 16, z_dim)
    return p


def reference_forward(context, prior, eps, p, *, z_dim, action_dim, state_dim, hidden):
    """Pure-JAX reference mirroring the PyTorch forward (use_prev_state=False,
    detach_every=None — detach only affects gradients, not forward values)."""
    B, T, _ = context.shape
    act = context[:, :, 0:action_dim]
    rew = context[:, :, action_dim:action_dim + 1]
    st = context[:, :, action_dim + 1:action_dim + 1 + state_dim]
    prior_rep = jnp.broadcast_to(prior[:, None, :], (B, T, 2 * z_dim))

    a_e = _elu(act @ p["wa"] + p["ba"])
    r_e = _elu(rew @ p["wr"] + p["br"])
    s_e = _elu(st @ p["ws"] + p["bs"])
    p_e = _elu(prior_rep @ p["wp"] + p["bp"])
    x = jnp.concatenate([a_e, r_e, s_e, p_e], axis=2)          # (B, T, n_in)

    H = hidden
    def step(h, x_t):
        gi = x_t @ p["wih"] + p["bih"]
        gh = h @ p["whh"] + p["bhh"]
        r = jax.nn.sigmoid(gi[:, :H] + gh[:, :H])
        zg = jax.nn.sigmoid(gi[:, H:2 * H] + gh[:, H:2 * H])
        n = jnp.tanh(gi[:, 2 * H:] + r * gh[:, 2 * H:])
        h_new = (1.0 - zg) * n + zg * h
        return h_new, None

    h0 = jnp.zeros((B, H), jnp.float32)
    h_last, _ = lax.scan(step, h0, jnp.transpose(x, (1, 0, 2)))

    t = _elu(h_last)
    trust = jnp.full((B, 1), 1.0 / T, jnp.float32)
    t = jnp.concatenate([t, prior, trust], axis=1)
    t = _elu(t @ p["w3"] + p["b3"])
    mu = t @ p["w41"] + p["b41"]
    logvar = t @ p["w42"] + p["b42"]
    z = mu + eps * jnp.exp(0.5 * logvar)
    return z, mu, logvar


if __name__ == "__main__":
    # Small, module-consistent shapes.
    z_dim = 5
    action_dim = 6
    action_embedding_dim = 8
    state_dim = 10
    state_embedding_dim = 8
    reward_embedding_dim = 4
    prior_embedding_dim = 8
    hidden = 32
    B, T = 2, 8
    C = action_dim + 1 + state_dim    # 17

    root = jax.random.PRNGKey(0)
    k_ctx, k_prior, k_eps, k_params = jax.random.split(root, 4)

    context = jax.random.normal(k_ctx, (B, T, C), jnp.float32)
    prior = jax.random.normal(k_prior, (B, 2 * z_dim), jnp.float32)
    eps = jax.random.normal(k_eps, (B, z_dim), jnp.float32)

    params = init_params(
        k_params,
        z_dim=z_dim, action_dim=action_dim,
        action_embedding_dim=action_embedding_dim,
        state_dim=state_dim, state_embedding_dim=state_embedding_dim,
        reward_embedding_dim=reward_embedding_dim,
        prior_embedding_dim=prior_embedding_dim,
        hidden=hidden,
    )

    # Pack once (trust = 1/T folded here; off the hot path).
    packed = pack_params(
        params,
        z_dim=z_dim, action_dim=action_dim,
        action_embedding_dim=action_embedding_dim,
        state_dim=state_dim, state_embedding_dim=state_embedding_dim,
        reward_embedding_dim=reward_embedding_dim,
        prior_embedding_dim=prior_embedding_dim,
        hidden=hidden, seq_len=T,
    )

    z, mu, logvar = embedding_inference_forward(
        context, prior, eps, packed,
        z_dim=z_dim, action_dim=action_dim, state_dim=state_dim,
        action_embedding_dim=action_embedding_dim,
        state_embedding_dim=state_embedding_dim,
        reward_embedding_dim=reward_embedding_dim,
        prior_embedding_dim=prior_embedding_dim,
        hidden=hidden,
    )
    jax.block_until_ready((z, mu, logvar))

    # Sanity check against the pure-JAX reference.
    z_r, mu_r, lv_r = reference_forward(
        context, prior, eps, params,
        z_dim=z_dim, action_dim=action_dim, state_dim=state_dim, hidden=hidden,
    )
    np.testing.assert_allclose(np.asarray(mu), np.asarray(mu_r), rtol=2e-3, atol=2e-3)
    np.testing.assert_allclose(np.asarray(logvar), np.asarray(lv_r), rtol=2e-3, atol=2e-3)
    np.testing.assert_allclose(np.asarray(z), np.asarray(z_r), rtol=2e-3, atol=2e-3)

    print("KERNEL_OK")
</pallas_src>

<mosaic_0001>
module attributes {stable_mosaic.version = 11 : i64} {
  func.func @_embed_infer_kernel(%arg0: memref<16x17xf32, #tpu.memory_space<vmem>>, %arg1: memref<10x10xf32, #tpu.memory_space<vmem>>, %arg2: memref<176x128xf32, #tpu.memory_space<vmem>>, %arg3: memref<2x10xf32, #tpu.memory_space<vmem>>, %arg4: memref<2x5xf32, #tpu.memory_space<vmem>>) attributes {dimension_semantics = [], scalar_prefetch = 0 : i64, scratch_operands = 0 : i64, tpu.core_type = #tpu.core_type<tc>} {
    %c0 = arith.constant 0 : index
    %c0_0 = arith.constant 0 : index
    %0 = vector.load %arg0[%c0, %c0_0] : memref<16x17xf32, #tpu.memory_space<vmem>>, vector<16x17xf32>
    %c0_1 = arith.constant 0 : index
    %c0_2 = arith.constant 0 : index
    %1 = vector.load %arg1[%c0_1, %c0_2] : memref<10x10xf32, #tpu.memory_space<vmem>>, vector<2x10xf32>
    %c8 = arith.constant 8 : index
    %c0_3 = arith.constant 0 : index
    %2 = vector.load %arg1[%c8, %c0_3] : memref<10x10xf32, #tpu.memory_space<vmem>>, vector<2x5xf32>
    %c0_4 = arith.constant 0 : index
    %c0_5 = arith.constant 0 : index
    %3 = vector.load %arg2[%c0_4, %c0_5] : memref<176x128xf32, #tpu.memory_space<vmem>>, vector<17x20xf32>
    %c24 = arith.constant 24 : index
    %c0_6 = arith.constant 0 : index
    %4 = vector.load %arg2[%c24, %c0_6] : memref<176x128xf32, #tpu.memory_space<vmem>>, vector<10x8xf32>
    %c40 = arith.constant 40 : index
    %c0_7 = arith.constant 0 : index
    %5 = vector.load %arg2[%c40, %c0_7] : memref<176x128xf32, #tpu.memory_space<vmem>>, vector<32x16xf32>
    %c72 = arith.constant 72 : index
    %c0_8 = arith.constant 0 : index
    %6 = vector.load %arg2[%c72, %c0_8] : memref<176x128xf32, #tpu.memory_space<vmem>>, vector<10x16xf32>
    %c88 = arith.constant 88 : index
    %c0_9 = arith.constant 0 : index
    %7 = vector.load %arg2[%c88, %c0_9] : memref<176x128xf32, #tpu.memory_space<vmem>>, vector<16x10xf32>
    %c104 = arith.constant 104 : index
    %c0_10 = arith.constant 0 : index
    %8 = vector.load %arg2[%c104, %c0_10] : memref<176x128xf32, #tpu.memory_space<vmem>>, vector<20x96xf32>
    %c128 = arith.constant 128 : index
    %c0_11 = arith.constant 0 : index
    %9 = vector.load %arg2[%c128, %c0_11] : memref<176x128xf32, #tpu.memory_space<vmem>>, vector<8x96xf32>
    %c136 = arith.constant 136 : index
    %c0_12 = arith.constant 0 : index
    %10 = vector.load %arg2[%c136, %c0_12] : memref<176x128xf32, #tpu.memory_space<vmem>>, vector<32x96xf32>
    %c168 = arith.constant 168 : index
    %c0_13 = arith.constant 0 : index
    %11 = vector.load %arg2[%c168, %c0_13] : memref<176x128xf32, #tpu.memory_space<vmem>>, vector<8x128xf32>
    %12 = vector.extract_strided_slice %11 {offsets = [0, 0], sizes = [1, 20], strides = [1, 1]} : vector<8x128xf32> to vector<1x20xf32>
    %13 = vector.extract_strided_slice %11 {offsets = [1, 0], sizes = [1, 8], strides = [1, 1]} : vector<8x128xf32> to vector<1x8xf32>
    %14 = vector.extract_strided_slice %11 {offsets = [2, 0], sizes = [1, 96], strides = [1, 1]} : vector<8x128xf32> to vector<1x96xf32>
    %15 = vector.extract_strided_slice %11 {offsets = [3, 0], sizes = [1, 32], strides = [1, 1]} : vector<8x128xf32> to vector<1x32xf32>
    %16 = vector.extract_strided_slice %11 {offsets = [4, 0], sizes = [1, 16], strides = [1, 1]} : vector<8x128xf32> to vector<1x16xf32>
    %17 = vector.extract_strided_slice %11 {offsets = [5, 0], sizes = [1, 10], strides = [1, 1]} : vector<8x128xf32> to vector<1x10xf32>
    %cst = arith.constant dense<0.000000e+00> : vector<16x20xf32>
    %18 = tpu.matmul %0, %3, %cst {dimension_numbers = #tpu.dot_dimension_numbers<[1], [0], [0], [1], [0, 0, 1, 1], [], []>} : vector<16x17xf32>, vector<17x20xf32>, vector<16x20xf32> -> vector<16x20xf32>
    %19 = vector.broadcast %12 : vector<1x20xf32> to vector<16x20xf32>
    %20 = arith.addf %18, %19 : vector<16x20xf32>
    %cst_14 = arith.constant 0.000000e+00 : f32
    %21 = vector.broadcast %cst_14 : f32 to vector<16x20xf32>
    %22 = arith.cmpf ogt, %20, %21 : vector<16x20xf32>
    %cst_15 = arith.constant 0.000000e+00 : f32
    %23 = vector.broadcast %cst_15 : f32 to vector<16x20xf32>
    %24 = arith.minimumf %20, %23 : vector<16x20xf32>
    %25 = math.exp %24 : vector<16x20xf32>
    %cst_16 = arith.constant 1.000000e+00 : f32
    %26 = vector.broadcast %cst_16 : f32 to vector<16x20xf32>
    %27 = arith.subf %25, %26 : vector<16x20xf32>
    %28 = arith.select %22, %20, %27 : vector<16x20xi1>, vector<16x20xf32>
    %cst_17 = arith.constant dense<0.000000e+00> : vector<2x8xf32>
    %29 = tpu.matmul %1, %4, %cst_17 {dimension_numbers = #tpu.dot_dimension_numbers<[1], [0], [0], [1], [0, 0, 1, 1], [], []>} : vector<2x10xf32>, vector<10x8xf32>, vector<2x8xf32> -> vector<2x8xf32>
    %30 = vector.broadcast %13 : vector<1x8xf32> to vector<2x8xf32>
    %31 = arith.addf %29, %30 : vector<2x8xf32>
    %cst_18 = arith.constant 0.000000e+00 : f32
    %32 = vector.broadcast %cst_18 : f32 to vector<2x8xf32>
    %33 = arith.cmpf ogt, %31, %32 : vector<2x8xf32>
    %cst_19 = arith.constant 0.000000e+00 : f32
    %34 = vector.broadcast %cst_19 : f32 to vector<2x8xf32>
    %35 = arith.minimumf %31, %34 : vector<2x8xf32>
    %36 = math.exp %35 : vector<2x8xf32>
    %cst_20 = arith.constant 1.000000e+00 : f32
    %37 = vector.broadcast %cst_20 : f32 to vector<2x8xf32>
    %38 = arith.subf %36, %37 : vector<2x8xf32>
    %39 = arith.select %33, %31, %38 : vector<2x8xi1>, vector<2x8xf32>
    %cst_21 = arith.constant dense<0.000000e+00> : vector<16x96xf32>
    %40 = tpu.matmul %28, %8, %cst_21 {dimension_numbers = #tpu.dot_dimension_numbers<[1], [0], [0], [1], [0, 0, 1, 1], [], []>} : vector<16x20xf32>, vector<20x96xf32>, vector<16x96xf32> -> vector<16x96xf32>
    %cst_22 = arith.constant dense<0.000000e+00> : vector<2x96xf32>
    %41 = tpu.matmul %39, %9, %cst_22 {dimension_numbers = #tpu.dot_dimension_numbers<[1], [0], [0], [1], [0, 0, 1, 1], [], []>} : vector<2x8xf32>, vector<8x96xf32>, vector<2x96xf32> -> vector<2x96xf32>
    %42 = vector.broadcast %14 : vector<1x96xf32> to vector<2x96xf32>
    %43 = arith.addf %41, %42 : vector<2x96xf32>
    %44 = vector.extract_strided_slice %40 {offsets = [0, 0], sizes = [2, 96], strides = [1, 1]} : vector<16x96xf32> to vector<2x96xf32>
    %45 = arith.addf %44, %43 : vector<2x96xf32>
    %46 = vector.extract_strided_slice %40 {offsets = [2, 0], sizes = [2, 96], strides = [1, 1]} : vector<16x96xf32> to vector<2x96xf32>
    %47 = arith.addf %46, %43 : vector<2x96xf32>
    %48 = vector.extract_strided_slice %40 {offsets = [4, 0], sizes = [2, 96], strides = [1, 1]} : vector<16x96xf32> to vector<2x96xf32>
    %49 = arith.addf %48, %43 : vector<2x96xf32>
    %50 = vector.extract_strided_slice %40 {offsets = [6, 0], sizes = [2, 96], strides = [1, 1]} : vector<16x96xf32> to vector<2x96xf32>
    %51 = arith.addf %50, %43 : vector<2x96xf32>
    %52 = vector.extract_strided_slice %40 {offsets = [8, 0], sizes = [2, 96], strides = [1, 1]} : vector<16x96xf32> to vector<2x96xf32>
    %53 = arith.addf %52, %43 : vector<2x96xf32>
    %54 = vector.extract_strided_slice %40 {offsets = [10, 0], sizes = [2, 96], strides = [1, 1]} : vector<16x96xf32> to vector<2x96xf32>
    %55 = arith.addf %54, %43 : vector<2x96xf32>
    %56 = vector.extract_strided_slice %40 {offsets = [12, 0], sizes = [2, 96], strides = [1, 1]} : vector<16x96xf32> to vector<2x96xf32>
    %57 = arith.addf %56, %43 : vector<2x96xf32>
    %58 = vector.extract_strided_slice %40 {offsets = [14, 0], sizes = [2, 96], strides = [1, 1]} : vector<16x96xf32> to vector<2x96xf32>
    %59 = arith.addf %58, %43 : vector<2x96xf32>
    %60 = vector.shape_cast %15 : vector<1x32xf32> to vector<1x32xf32>
    %61 = vector.broadcast %60 : vector<1x32xf32> to vector<2x32xf32>
    %cst_23 = arith.constant dense<0.000000e+00> : vector<2x16xf32>
    %62 = tpu.matmul %1, %6, %cst_23 {dimension_numbers = #tpu.dot_dimension_numbers<[1], [0], [0], [1], [0, 0, 1, 1], [], []>} : vector<2x10xf32>, vector<10x16xf32>, vector<2x16xf32> -> vector<2x16xf32>
    %63 = vector.broadcast %16 : vector<1x16xf32> to vector<2x16xf32>
    %64 = arith.addf %62, %63 : vector<2x16xf32>
    %cst_24 = arith.constant 0.000000e+00 : f32
    %65 = vector.broadcast %cst_24 : f32 to vector<2x32xf32>
    %cst_25 = arith.constant dense<0.000000e+00> : vector<2x96xf32>
    %66 = tpu.matmul %65, %10, %cst_25 {dimension_numbers = #tpu.dot_dimension_numbers<[1], [0], [0], [1], [0, 0, 1, 1], [], []>} : vector<2x32xf32>, vector<32x96xf32>, vector<2x96xf32> -> vector<2x96xf32>
    %67 = vector.extract_strided_slice %45 {offsets = [0, 0], sizes = [2, 32], strides = [1, 1]} : vector<2x96xf32> to vector<2x32xf32>
    %68 = vector.extract_strided_slice %66 {offsets = [0, 0], sizes = [2, 32], strides = [1, 1]} : vector<2x96xf32> to vector<2x32xf32>
    %69 = arith.addf %67, %68 : vector<2x32xf32>
    %70 = arith.negf %69 : vector<2x32xf32>
    %71 = math.exp %70 : vector<2x32xf32>
    %cst_26 = arith.constant 1.000000e+00 : f32
    %72 = vector.broadcast %cst_26 : f32 to vector<2x32xf32>
    %73 = arith.addf %72, %71 : vector<2x32xf32>
    %74 = arith.divf %72, %73 : vector<2x32xf32>
    %75 = vector.extract_strided_slice %45 {offsets = [0, 32], sizes = [2, 32], strides = [1, 1]} : vector<2x96xf32> to vector<2x32xf32>
    %76 = vector.extract_strided_slice %66 {offsets = [0, 32], sizes = [2, 32], strides = [1, 1]} : vector<2x96xf32> to vector<2x32xf32>
    %77 = arith.addf %75, %76 : vector<2x32xf32>
    %78 = arith.negf %77 : vector<2x32xf32>
    %79 = math.exp %78 : vector<2x32xf32>
    %cst_27 = arith.constant 1.000000e+00 : f32
    %80 = vector.broadcast %cst_27 : f32 to vector<2x32xf32>
    %81 = arith.addf %80, %79 : vector<2x32xf32>
    %82 = arith.divf %80, %81 : vector<2x32xf32>
    %83 = vector.extract_strided_slice %45 {offsets = [0, 64], sizes = [2, 32], strides = [1, 1]} : vector<2x96xf32> to vector<2x32xf32>
    %84 = vector.extract_strided_slice %66 {offsets = [0, 64], sizes = [2, 32], strides = [1, 1]} : vector<2x96xf32> to vector<2x32xf32>
    %85 = arith.addf %84, %61 : vector<2x32xf32>
    %86 = arith.mulf %74, %85 : vector<2x32xf32>
    %87 = arith.addf %83, %86 : vector<2x32xf32>
    %88 = math.tanh %87 : vector<2x32xf32>
    %cst_28 = arith.constant 1.000000e+00 : f32
    %89 = vector.broadcast %cst_28 : f32 to vector<2x32xf32>
    %90 = arith.subf %89, %82 : vector<2x32xf32>
    %91 = arith.mulf %90, %88 : vector<2x32xf32>
    %92 = arith.mulf %82, %65 : vector<2x32xf32>
    %93 = arith.addf %91, %92 : vector<2x32xf32>
    %cst_29 = arith.constant dense<0.000000e+00> : vector<2x96xf32>
    %94 = tpu.matmul %93, %10, %cst_29 {dimension_numbers = #tpu.dot_dimension_numbers<[1], [0], [0], [1], [0, 0, 1, 1], [], []>} : vector<2x32xf32>, vector<32x96xf32>, vector<2x96xf32> -> vector<2x96xf32>
    %95 = vector.extract_strided_slice %47 {offsets = [0, 0], sizes = [2, 32], strides = [1, 1]} : vector<2x96xf32> to vector<2x32xf32>
    %96 = vector.extract_strided_slice %94 {offsets = [0, 0], sizes = [2, 32], strides = [1, 1]} : vector<2x96xf32> to vector<2x32xf32>
    %97 = arith.addf %95, %96 : vector<2x32xf32>
    %98 = arith.negf %97 : vector<2x32xf32>
    %99 = math.exp %98 : vector<2x32xf32>
    %cst_30 = arith.constant 1.000000e+00 : f32
    %100 = vector.broadcast %cst_30 : f32 to vector<2x32xf32>
    %101 = arith.addf %100, %99 : vector<2x32xf32>
    %102 = arith.divf %100, %101 : vector<2x32xf32>
    %103 = vector.extract_strided_slice %47 {offsets = [0, 32], sizes = [2, 32], strides = [1, 1]} : vector<2x96xf32> to vector<2x32xf32>
    %104 = vector.extract_strided_slice %94 {offsets = [0, 32], sizes = [2, 32], strides = [1, 1]} : vector<2x96xf32> to vector<2x32xf32>
    %105 = arith.addf %103, %104 : vector<2x32xf32>
    %106 = arith.negf %105 : vector<2x32xf32>
    %107 = math.exp %106 : vector<2x32xf32>
    %cst_31 = arith.constant 1.000000e+00 : f32
    %108 = vector.broadcast %cst_31 : f32 to vector<2x32xf32>
    %109 = arith.addf %108, %107 : vector<2x32xf32>
    %110 = arith.divf %108, %109 : vector<2x32xf32>
    %111 = vector.extract_strided_slice %47 {offsets = [0, 64], sizes = [2, 32], strides = [1, 1]} : vector<2x96xf32> to vector<2x32xf32>
    %112 = vector.extract_strided_slice %94 {offsets = [0, 64], sizes = [2, 32], strides = [1, 1]} : vector<2x96xf32> to vector<2x32xf32>
    %113 = arith.addf %112, %61 : vector<2x32xf32>
    %114 = arith.mulf %102, %113 : vector<2x32xf32>
    %115 = arith.addf %111, %114 : vector<2x32xf32>
    %116 = math.tanh %115 : vector<2x32xf32>
    %cst_32 = arith.constant 1.000000e+00 : f32
    %117 = vector.broadcast %cst_32 : f32 to vector<2x32xf32>
    %118 = arith.subf %117, %110 : vector<2x32xf32>
    %119 = arith.mulf %118, %116 : vector<2x32xf32>
    %120 = arith.mulf %110, %93 : vector<2x32xf32>
    %121 = arith.addf %119, %120 : vector<2x32xf32>
    %cst_33 = arith.constant dense<0.000000e+00> : vector<2x96xf32>
    %122 = tpu.matmul %121, %10, %cst_33 {dimension_numbers = #tpu.dot_dimension_numbers<[1], [0], [0], [1], [0, 0, 1, 1], [], []>} : vector<2x32xf32>, vector<32x96xf32>, vector<2x96xf32> -> vector<2x96xf32>
    %123 = vector.extract_strided_slice %49 {offsets = [0, 0], sizes = [2, 32], strides = [1, 1]} : vector<2x96xf32> to vector<2x32xf32>
    %124 = vector.extract_strided_slice %122 {offsets = [0, 0], sizes = [2, 32], strides = [1, 1]} : vector<2x96xf32> to vector<2x32xf32>
    %125 = arith.addf %123, %124 : vector<2x32xf32>
    %126 = arith.negf %125 : vector<2x32xf32>
    %127 = math.exp %126 : vector<2x32xf32>
    %cst_34 = arith.constant 1.000000e+00 : f32
    %128 = vector.broadcast %cst_34 : f32 to vector<2x32xf32>
    %129 = arith.addf %128, %127 : vector<2x32xf32>
    %130 = arith.divf %128, %129 : vector<2x32xf32>
    %131 = vector.extract_strided_slice %49 {offsets = [0, 32], sizes = [2, 32], strides = [1, 1]} : vector<2x96xf32> to vector<2x32xf32>
    %132 = vector.extract_strided_slice %122 {offsets = [0, 32], sizes = [2, 32], strides = [1, 1]} : vector<2x96xf32> to vector<2x32xf32>
    %133 = arith.addf %131, %132 : vector<2x32xf32>
    %134 = arith.negf %133 : vector<2x32xf32>
    %135 = math.exp %134 : vector<2x32xf32>
    %cst_35 = arith.constant 1.000000e+00 : f32
    %136 = vector.broadcast %cst_35 : f32 to vector<2x32xf32>
    %137 = arith.addf %136, %135 : vector<2x32xf32>
    %138 = arith.divf %136, %137 : vector<2x32xf32>
    %139 = vector.extract_strided_slice %49 {offsets = [0, 64], sizes = [2, 32], strides = [1, 1]} : vector<2x96xf32> to vector<2x32xf32>
    %140 = vector.extract_strided_slice %122 {offsets = [0, 64], sizes = [2, 32], strides = [1, 1]} : vector<2x96xf32> to vector<2x32xf32>
    %141 = arith.addf %140, %61 : vector<2x32xf32>
    %142 = arith.mulf %130, %141 : vector<2x32xf32>
    %143 = arith.addf %139, %142 : vector<2x32xf32>
    %144 = math.tanh %143 : vector<2x32xf32>
    %cst_36 = arith.constant 1.000000e+00 : f32
    %145 = vector.broadcast %cst_36 : f32 to vector<2x32xf32>
    %146 = arith.subf %145, %138 : vector<2x32xf32>
    %147 = arith.mulf %146, %144 : vector<2x32xf32>
    %148 = arith.mulf %138, %121 : vector<2x32xf32>
    %149 = arith.addf %147, %148 : vector<2x32xf32>
    %cst_37 = arith.constant dense<0.000000e+00> : vector<2x96xf32>
    %150 = tpu.matmul %149, %10, %cst_37 {dimension_numbers = #tpu.dot_dimension_numbers<[1], [0], [0], [1], [0, 0, 1, 1], [], []>} : vector<2x32xf32>, vector<32x96xf32>, vector<2x96xf32> -> vector<2x96xf32>
    %151 = vector.extract_strided_slice %51 {offsets = [0, 0], sizes = [2, 32], strides = [1, 1]} : vector<2x96xf32> to vector<2x32xf32>
    %152 = vector.extract_strided_slice %150 {offsets = [0, 0], sizes = [2, 32], strides = [1, 1]} : vector<2x96xf32> to vector<2x32xf32>
    %153 = arith.addf %151, %152 : vector<2x32xf32>
    %154 = arith.negf %153 : vector<2x32xf32>
    %155 = math.exp %154 : vector<2x32xf32>
    %cst_38 = arith.constant 1.000000e+00 : f32
    %156 = vector.broadcast %cst_38 : f32 to vector<2x32xf32>
    %157 = arith.addf %156, %155 : vector<2x32xf32>
    %158 = arith.divf %156, %157 : vector<2x32xf32>
    %159 = vector.extract_strided_slice %51 {offsets = [0, 32], sizes = [2, 32], strides = [1, 1]} : vector<2x96xf32> to vector<2x32xf32>
    %160 = vector.extract_strided_slice %150 {offsets = [0, 32], sizes = [2, 32], strides = [1, 1]} : vector<2x96xf32> to vector<2x32xf32>
    %161 = arith.addf %159, %160 : vector<2x32xf32>
    %162 = arith.negf %161 : vector<2x32xf32>
    %163 = math.exp %162 : vector<2x32xf32>
    %cst_39 = arith.constant 1.000000e+00 : f32
    %164 = vector.broadcast %cst_39 : f32 to vector<2x32xf32>
    %165 = arith.addf %164, %163 : vector<2x32xf32>
    %166 = arith.divf %164, %165 : vector<2x32xf32>
    %167 = vector.extract_strided_slice %51 {offsets = [0, 64], sizes = [2, 32], strides = [1, 1]} : vector<2x96xf32> to vector<2x32xf32>
    %168 = vector.extract_strided_slice %150 {offsets = [0, 64], sizes = [2, 32], strides = [1, 1]} : vector<2x96xf32> to vector<2x32xf32>
    %169 = arith.addf %168, %61 : vector<2x32xf32>
    %170 = arith.mulf %158, %169 : vector<2x32xf32>
    %171 = arith.addf %167, %170 : vector<2x32xf32>
    %172 = math.tanh %171 : vector<2x32xf32>
    %cst_40 = arith.constant 1.000000e+00 : f32
    %173 = vector.broadcast %cst_40 : f32 to vector<2x32xf32>
    %174 = arith.subf %173, %166 : vector<2x32xf32>
    %175 = arith.mulf %174, %172 : vector<2x32xf32>
    %176 = arith.mulf %166, %149 : vector<2x32xf32>
    %177 = arith.addf %175, %176 : vector<2x32xf32>
    %cst_41 = arith.constant dense<0.000000e+00> : vector<2x96xf32>
    %178 = tpu.matmul %177, %10, %cst_41 {dimension_numbers = #tpu.dot_dimension_numbers<[1], [0], [0], [1], [0, 0, 1, 1], [], []>} : vector<2x32xf32>, vector<32x96xf32>, vector<2x96xf32> -> vector<2x96xf32>
    %179 = vector.extract_strided_slice %53 {offsets = [0, 0], sizes = [2, 32], strides = [1, 1]} : vector<2x96xf32> to vector<2x32xf32>
    %180 = vector.extract_strided_slice %178 {offsets = [0, 0], sizes = [2, 32], strides = [1, 1]} : vector<2x96xf32> to vector<2x32xf32>
    %181 = arith.addf %179, %180 : vector<2x32xf32>
    %182 = arith.negf %181 : vector<2x32xf32>
    %183 = math.exp %182 : vector<2x32xf32>
    %cst_42 = arith.constant 1.000000e+00 : f32
    %184 = vector.broadcast %cst_42 : f32 to vector<2x32xf32>
    %185 = arith.addf %184, %183 : vector<2x32xf32>
    %186 = arith.divf %184, %185 : vector<2x32xf32>
    %187 = vector.extract_strided_slice %53 {offsets = [0, 32], sizes = [2, 32], strides = [1, 1]} : vector<2x96xf32> to vector<2x32xf32>
    %188 = vector.extract_strided_slice %178 {offsets = [0, 32], sizes = [2, 32], strides = [1, 1]} : vector<2x96xf32> to vector<2x32xf32>
    %189 = arith.addf %187, %188 : vector<2x32xf32>
    %190 = arith.negf %189 : vector<2x32xf32>
    %191 = math.exp %190 : vector<2x32xf32>
    %cst_43 = arith.constant 1.000000e+00 : f32
    %192 = vector.broadcast %cst_43 : f32 to vector<2x32xf32>
    %193 = arith.addf %192, %191 : vector<2x32xf32>
    %194 = arith.divf %192, %193 : vector<2x32xf32>
    %195 = vector.extract_strided_slice %53 {offsets = [0, 64], sizes = [2, 32], strides = [1, 1]} : vector<2x96xf32> to vector<2x32xf32>
    %196 = vector.extract_strided_slice %178 {offsets = [0, 64], sizes = [2, 32], strides = [1, 1]} : vector<2x96xf32> to vector<2x32xf32>
    %197 = arith.addf %196, %61 : vector<2x32xf32>
    %198 = arith.mulf %186, %197 : vector<2x32xf32>
    %199 = arith.addf %195, %198 : vector<2x32xf32>
    %200 = math.tanh %199 : vector<2x32xf32>
    %cst_44 = arith.constant 1.000000e+00 : f32
    %201 = vector.broadcast %cst_44 : f32 to vector<2x32xf32>
    %202 = arith.subf %201, %194 : vector<2x32xf32>
    %203 = arith.mulf %202, %200 : vector<2x32xf32>
    %204 = arith.mulf %194, %177 : vector<2x32xf32>
    %205 = arith.addf %203, %204 : vector<2x32xf32>
    %cst_45 = arith.constant dense<0.000000e+00> : vector<2x96xf32>
    %206 = tpu.matmul %205, %10, %cst_45 {dimension_numbers = #tpu.dot_dimension_numbers<[1], [0], [0], [1], [0, 0, 1, 1], [], []>} : vector<2x32xf32>, vector<32x96xf32>, vector<2x96xf32> -> vector<2x96xf32>
    %207 = vector.extract_strided_slice %55 {offsets = [0, 0], sizes = [2, 32], strides = [1, 1]} : vector<2x96xf32> to vector<2x32xf32>
    %208 = vector.extract_strided_slice %206 {offsets = [0, 0], sizes = [2, 32], strides = [1, 1]} : vector<2x96xf32> to vector<2x32xf32>
    %209 = arith.addf %207, %208 : vector<2x32xf32>
    %210 = arith.negf %209 : vector<2x32xf32>
    %211 = math.exp %210 : vector<2x32xf32>
    %cst_46 = arith.constant 1.000000e+00 : f32
    %212 = vector.broadcast %cst_46 : f32 to vector<2x32xf32>
    %213 = arith.addf %212, %211 : vector<2x32xf32>
    %214 = arith.divf %212, %213 : vector<2x32xf32>
    %215 = vector.extract_strided_slice %55 {offsets = [0, 32], sizes = [2, 32], strides = [1, 1]} : vector<2x96xf32> to vector<2x32xf32>
    %216 = vector.extract_strided_slice %206 {offsets = [0, 32], sizes = [2, 32], strides = [1, 1]} : vector<2x96xf32> to vector<2x32xf32>
    %217 = arith.addf %215, %216 : vector<2x32xf32>
    %218 = arith.negf %217 : vector<2x32xf32>
    %219 = math.exp %218 : vector<2x32xf32>
    %cst_47 = arith.constant 1.000000e+00 : f32
    %220 = vector.broadcast %cst_47 : f32 to vector<2x32xf32>
    %221 = arith.addf %220, %219 : vector<2x32xf32>
    %222 = arith.divf %220, %221 : vector<2x32xf32>
    %223 = vector.extract_strided_slice %55 {offsets = [0, 64], sizes = [2, 32], strides = [1, 1]} : vector<2x96xf32> to vector<2x32xf32>
    %224 = vector.extract_strided_slice %206 {offsets = [0, 64], sizes = [2, 32], strides = [1, 1]} : vector<2x96xf32> to vector<2x32xf32>
    %225 = arith.addf %224, %61 : vector<2x32xf32>
    %226 = arith.mulf %214, %225 : vector<2x32xf32>
    %227 = arith.addf %223, %226 : vector<2x32xf32>
    %228 = math.tanh %227 : vector<2x32xf32>
    %cst_48 = arith.constant 1.000000e+00 : f32
    %229 = vector.broadcast %cst_48 : f32 to vector<2x32xf32>
    %230 = arith.subf %229, %222 : vector<2x32xf32>
    %231 = arith.mulf %230, %228 : vector<2x32xf32>
    %232 = arith.mulf %222, %205 : vector<2x32xf32>
    %233 = arith.addf %231, %232 : vector<2x32xf32>
    %cst_49 = arith.constant dense<0.000000e+00> : vector<2x96xf32>
    %234 = tpu.matmul %233, %10, %cst_49 {dimension_numbers = #tpu.dot_dimension_numbers<[1], [0], [0], [1], [0, 0, 1, 1], [], []>} : vector<2x32xf32>, vector<32x96xf32>, vector<2x96xf32> -> vector<2x96xf32>
    %235 = vector.extract_strided_slice %57 {offsets = [0, 0], sizes = [2, 32], strides = [1, 1]} : vector<2x96xf32> to vector<2x32xf32>
    %236 = vector.extract_strided_slice %234 {offsets = [0, 0], sizes = [2, 32], strides = [1, 1]} : vector<2x96xf32> to vector<2x32xf32>
    %237 = arith.addf %235, %236 : vector<2x32xf32>
    %238 = arith.negf %237 : vector<2x32xf32>
    %239 = math.exp %238 : vector<2x32xf32>
    %cst_50 = arith.constant 1.000000e+00 : f32
    %240 = vector.broadcast %cst_50 : f32 to vector<2x32xf32>
    %241 = arith.addf %240, %239 : vector<2x32xf32>
    %242 = arith.divf %240, %241 : vector<2x32xf32>
    %243 = vector.extract_strided_slice %57 {offsets = [0, 32], sizes = [2, 32], strides = [1, 1]} : vector<2x96xf32> to vector<2x32xf32>
    %244 = vector.extract_strided_slice %234 {offsets = [0, 32], sizes = [2, 32], strides = [1, 1]} : vector<2x96xf32> to vector<2x32xf32>
    %245 = arith.addf %243, %244 : vector<2x32xf32>
    %246 = arith.negf %245 : vector<2x32xf32>
    %247 = math.exp %246 : vector<2x32xf32>
    %cst_51 = arith.constant 1.000000e+00 : f32
    %248 = vector.broadcast %cst_51 : f32 to vector<2x32xf32>
    %249 = arith.addf %248, %247 : vector<2x32xf32>
    %250 = arith.divf %248, %249 : vector<2x32xf32>
    %251 = vector.extract_strided_slice %57 {offsets = [0, 64], sizes = [2, 32], strides = [1, 1]} : vector<2x96xf32> to vector<2x32xf32>
    %252 = vector.extract_strided_slice %234 {offsets = [0, 64], sizes = [2, 32], strides = [1, 1]} : vector<2x96xf32> to vector<2x32xf32>
    %253 = arith.addf %252, %61 : vector<2x32xf32>
    %254 = arith.mulf %242, %253 : vector<2x32xf32>
    %255 = arith.addf %251, %254 : vector<2x32xf32>
    %256 = math.tanh %255 : vector<2x32xf32>
    %cst_52 = arith.constant 1.000000e+00 : f32
    %257 = vector.broadcast %cst_52 : f32 to vector<2x32xf32>
    %258 = arith.subf %257, %250 : vector<2x32xf32>
    %259 = arith.mulf %258, %256 : vector<2x32xf32>
    %260 = arith.mulf %250, %233 : vector<2x32xf32>
    %261 = arith.addf %259, %260 : vector<2x32xf32>
    %cst_53 = arith.constant dense<0.000000e+00> : vector<2x96xf32>
    %262 = tpu.matmul %261, %10, %cst_53 {dimension_numbers = #tpu.dot_dimension_numbers<[1], [0], [0], [1], [0, 0, 1, 1], [], []>} : vector<2x32xf32>, vector<32x96xf32>, vector<2x96xf32> -> vector<2x96xf32>
    %263 = vector.extract_strided_slice %59 {offsets = [0, 0], sizes = [2, 32], strides = [1, 1]} : vector<2x96xf32> to vector<2x32xf32>
    %264 = vector.extract_strided_slice %262 {offsets = [0, 0], sizes = [2, 32], strides = [1, 1]} : vector<2x96xf32> to vector<2x32xf32>
    %265 = arith.addf %263, %264 : vector<2x32xf32>
    %266 = arith.negf %265 : vector<2x32xf32>
    %267 = math.exp %266 : vector<2x32xf32>
    %cst_54 = arith.constant 1.000000e+00 : f32
    %268 = vector.broadcast %cst_54 : f32 to vector<2x32xf32>
    %269 = arith.addf %268, %267 : vector<2x32xf32>
    %270 = arith.divf %268, %269 : vector<2x32xf32>
    %271 = vector.extract_strided_slice %59 {offsets = [0, 32], sizes = [2, 32], strides = [1, 1]} : vector<2x96xf32> to vector<2x32xf32>
    %272 = vector.extract_strided_slice %262 {offsets = [0, 32], sizes = [2, 32], strides = [1, 1]} : vector<2x96xf32> to vector<2x32xf32>
    %273 = arith.addf %271, %272 : vector<2x32xf32>
    %274 = arith.negf %273 : vector<2x32xf32>
    %275 = math.exp %274 : vector<2x32xf32>
    %cst_55 = arith.constant 1.000000e+00 : f32
    %276 = vector.broadcast %cst_55 : f32 to vector<2x32xf32>
    %277 = arith.addf %276, %275 : vector<2x32xf32>
    %278 = arith.divf %276, %277 : vector<2x32xf32>
    %279 = vector.extract_strided_slice %59 {offsets = [0, 64], sizes = [2, 32], strides = [1, 1]} : vector<2x96xf32> to vector<2x32xf32>
    %280 = vector.extract_strided_slice %262 {offsets = [0, 64], sizes = [2, 32], strides = [1, 1]} : vector<2x96xf32> to vector<2x32xf32>
    %281 = arith.addf %280, %61 : vector<2x32xf32>
    %282 = arith.mulf %270, %281 : vector<2x32xf32>
    %283 = arith.addf %279, %282 : vector<2x32xf32>
    %284 = math.tanh %283 : vector<2x32xf32>
    %cst_56 = arith.constant 1.000000e+00 : f32
    %285 = vector.broadcast %cst_56 : f32 to vector<2x32xf32>
    %286 = arith.subf %285, %278 : vector<2x32xf32>
    %287 = arith.mulf %286, %284 : vector<2x32xf32>
    %288 = arith.mulf %278, %261 : vector<2x32xf32>
    %289 = arith.addf %287, %288 : vector<2x32xf32>
    %cst_57 = arith.constant 0.000000e+00 : f32
    %290 = vector.broadcast %cst_57 : f32 to vector<2x32xf32>
    %291 = arith.cmpf ogt, %289, %290 : vector<2x32xf32>
    %cst_58 = arith.constant 0.000000e+00 : f32
    %292 = vector.broadcast %cst_58 : f32 to vector<2x32xf32>
    %293 = arith.minimumf %289, %292 : vector<2x32xf32>
    %294 = math.exp %293 : vector<2x32xf32>
    %cst_59 = arith.constant 1.000000e+00 : f32
    %295 = vector.broadcast %cst_59 : f32 to vector<2x32xf32>
    %296 = arith.subf %294, %295 : vector<2x32xf32>
    %297 = arith.select %291, %289, %296 : vector<2x32xi1>, vector<2x32xf32>
    %cst_60 = arith.constant dense<0.000000e+00> : vector<2x16xf32>
    %298 = tpu.matmul %297, %5, %cst_60 {dimension_numbers = #tpu.dot_dimension_numbers<[1], [0], [0], [1], [0, 0, 1, 1], [], []>} : vector<2x32xf32>, vector<32x16xf32>, vector<2x16xf32> -> vector<2x16xf32>
    %299 = arith.addf %298, %64 : vector<2x16xf32>
    %cst_61 = arith.constant 0.000000e+00 : f32
    %300 = vector.broadcast %cst_61 : f32 to vector<2x16xf32>
    %301 = arith.cmpf ogt, %299, %300 : vector<2x16xf32>
    %cst_62 = arith.constant 0.000000e+00 : f32
    %302 = vector.broadcast %cst_62 : f32 to vector<2x16xf32>
    %303 = arith.minimumf %299, %302 : vector<2x16xf32>
    %304 = math.exp %303 : vector<2x16xf32>
    %cst_63 = arith.constant 1.000000e+00 : f32
    %305 = vector.broadcast %cst_63 : f32 to vector<2x16xf32>
    %306 = arith.subf %304, %305 : vector<2x16xf32>
    %307 = arith.select %301, %299, %306 : vector<2x16xi1>, vector<2x16xf32>
    %cst_64 = arith.constant dense<0.000000e+00> : vector<2x10xf32>
    %308 = tpu.matmul %307, %7, %cst_64 {dimension_numbers = #tpu.dot_dimension_numbers<[1], [0], [0], [1], [0, 0, 1, 1], [], []>} : vector<2x16xf32>, vector<16x10xf32>, vector<2x10xf32> -> vector<2x10xf32>
    %309 = vector.broadcast %17 : vector<1x10xf32> to vector<2x10xf32>
    %310 = arith.addf %308, %309 : vector<2x10xf32>
    %311 = vector.extract_strided_slice %310 {offsets = [0, 0], sizes = [2, 5], strides = [1, 1]} : vector<2x10xf32> to vector<2x5xf32>
    %312 = vector.extract_strided_slice %310 {offsets = [0, 5], sizes = [2, 5], strides = [1, 1]} : vector<2x10xf32> to vector<2x5xf32>
    %cst_65 = arith.constant 5.000000e-01 : f32
    %313 = vector.broadcast %cst_65 : f32 to vector<2x5xf32>
    %314 = arith.mulf %313, %312 : vector<2x5xf32>
    %315 = math.exp %314 : vector<2x5xf32>
    %316 = arith.mulf %2, %315 : vector<2x5xf32>
    %317 = arith.addf %311, %316 : vector<2x5xf32>
    %c0_66 = arith.constant 0 : index
    %c0_67 = arith.constant 0 : index
    %318 = vector.load %arg3[%c0_66, %c0_67] : memref<2x10xf32, #tpu.memory_space<vmem>>, vector<2x10xf32>
    tpu.vector_store %arg3[%c0_66, %c0_67], %310 {strides = array<i32>} : memref<2x10xf32, #tpu.memory_space<vmem>>, vector<2x10xf32>,
    %c0_68 = arith.constant 0 : index
    %c0_69 = arith.constant 0 : index
    %319 = vector.load %arg4[%c0_68, %c0_69] : memref<2x5xf32, #tpu.memory_space<vmem>>, vector<2x5xf32>
    tpu.vector_store %arg4[%c0_68, %c0_69], %317 {strides = array<i32>} : memref<2x5xf32, #tpu.memory_space<vmem>>, vector<2x5xf32>,
    return
  }
}

</mosaic_0001>

<bundles_post_ra>
// kernel: tpu_custom_call.1
= control target key start
LH: loop header
LB: loop body
LE: loop exit
PB: predicated region body
PF: predicated region fallthrough
CT: control target
= control target key end

     0   :  { %10 = vsyncpa [#allocation3], 0  ;;  %s1379_s0 = inlined_call_operand.hbm [shape: f32[16,17], index: 0, kind: input, shape index: {}]   ;;  %s1380_s1 = inlined_call_operand.hbm [shape: f32[10,10], index: 1, kind: input, shape index: {}]   ;;  %s1381_s2 = inlined_call_operand.hbm [shape: f32[176,128], index: 2, kind: input, shape index: {}]   ;;  %s1382_s3 = inlined_call_operand.hbm [shape: f32[2,10], index: 3, kind: output, shape index: {0}]   ;;  %s1383_s4 = inlined_call_operand.hbm [shape: f32[2,5], index: 4, kind: output, shape index: {1}]  }
   0x1   :  { %11 = vsyncpa [#allocation6], 0 }
   0x2   :  { %12 = vsyncpa [#allocation4], 0 }
   0x3   :  { %13 = vsyncpa [#allocation10], 0  ;;  %s31_s17 = sshll.u32 %s1380_s1, 4  ;;  %s1179_s18 = smov [#allocation5]   ;;  %s32_s17 = int_to_ptr.hbm [resolvable:$true] %s31_s17 }
   0x4   :  { %s33_s19 = sshll.u32 %s1179_s18, 4  ;;  %s18_s22 = sshll.u32 %s1379_s0, 4  ;;  %s34_s19 = int_to_ptr.vmem [resolvable:$true] %s33_s19  ;;  %s19_s22 = int_to_ptr.hbm [resolvable:$true] %s18_s22 }
   0x5   :  { %s1180_s23 = smov 128   ;;  %s1181_s24 = smov 8  }
   0x6   :  { %39 = dma.hbm_to_vmem [thread:$0]  %s32_s17, 256, %s34_s19, [#allocation6], %s1180_s23, %s1180_s23, %s1181_s24  }
   0x7   :  { %s1182_s25 = smov [#allocation2]   ;;  %s44_s29 = sshll.u32 %s1381_s2, 4  ;;  %s45_s29 = int_to_ptr.hbm [resolvable:$true] %s44_s29 }
   0x8   :  { %s20_s26 = sshll.u32 %s1182_s25, 4  ;;  %s1183_s1 = smov [#allocation7]   ;;  %s21_s26 = int_to_ptr.vmem [resolvable:$true] %s20_s26 }
   0x9   :  { %26 = dma.hbm_to_vmem [thread:$0]  %s19_s22, 256, %s21_s26, [#allocation3], %s1180_s23, %s1180_s23, %s1181_s24  }
   0xa   :  { %s46_s30 = sshll.u32 %s1183_s1, 4  ;;  %s47_s30 = int_to_ptr.vmem [resolvable:$true] %s46_s30 }
   0xb   :  { %52 = dma.hbm_to_vmem [thread:$0]  %s45_s29, 2816, %s47_s30, [#allocation6], %s1180_s23, %s1180_s23, %s1181_s24  }
   0xc   :  { %1171 = dma.done.wait [#allocation3], 256  }
   0xd   :  { %1172 = vsyncadd [#allocation3], 4294967040 }
   0xe   :  { %1173 = dma.done.wait [#allocation6], 3072  }
   0xf   :  { %1174 = vsyncadd [#allocation6], 4294964224  ;;  %vm99_vm0 = vcmask 1040384   ;;  %vm143_vm1 = vcmask 1041408   ;;  %v71_v0 = vld [vmem:[#allocation7 + $0x10] sm:$0x1] }
  0x10   :  { %v73_v1 = vld [vmem:[#allocation7 + $0x20] sm:$0x3]  ;;  %v70_v2 = vld [vmem:[#allocation7 + $0x8] sm:$0xff]  ;;  %947 = vmatpush.msk.msra.mxu0 %vm99_vm0, %v71_v0  ;;  %v72_v3 = vld [vmem:[#allocation7 + $0x18] sm:$0xff]  ;;  %vm139_vm2 = vcmask 80896   ;;  %vm92_vm3 = vcmask 138240  }
  0x11   :  { %952 = vmatpush.msk.msra.mxu1 %vm143_vm1, %v73_v1  ;;  %v1225_v4 = vld [vmem:[#allocation5] sm:$0x3]  ;;  %v69_v5 = vld [vmem:[#allocation7] sm:$0xff]  ;;  %v1231_v8 = vld [vmem:[#allocation7 + $0x98] sm:$0xff]  ;;  %s1184_s0 = smov 64   ;;  %v1185_v14 = vmov 0.0  }
  0x12   :  { %v1227_v6 = vld [vmem:[#allocation7 + $0xa0] sm:$0xff]  ;;  %117 = vmatpush.msra.mxu0 %v70_v2  ;;  %v1233_v9 = vld [vmem:[#allocation7 + $0xa8] sm:$0xff]  ;;  %v1238_v11 = vld [vmem:[#allocation7 + $0x90] sm:$0xff]  ;;  %vm180_vm4 = vcmask 1043456   ;;  %vm208_vm5 = vcmask 64512   ;;  %vm173_vm7 = vcmask 162816  }
  0x13   :  { %162 = vmatpush.msra.mxu1 %v72_v3  ;;  %v65_v7 = vld [vmem:[#allocation2] sm:$0xff]  ;;  %v247_v10 = vperm.slane %v1233_v9, 3  ;;  %v1242_v12 = vld [vmem:[#allocation7 + $0x88] sm:$0xff]  ;;  %v84_v15 = vld [vmem:[#allocation7 + $0x78] sm:$0xf]  ;;  %v138_v19 = vperm.slane %v1233_v9, 1 }
  0x14   :  { %953 = vmatmul.msk.f32.vlgmr.msra.gmra.mxu1 %vm139_vm2, %v1225_v4  ;;  %118 = vmatpush.msra.mxu0 %v69_v5  ;;  %v66_v13 = vld [vmem:[#allocation2 + $0x8] sm:$0xff]  ;;  %v83_v16 = vld [vmem:[#allocation7 + $0x70] sm:$0xff]  ;;  %v85_v17 = vld [vmem:[#allocation7 + $0x80] sm:$0xff]  ;;  %v91_v20 = vperm.slane %v1233_v9, 0  ;;  %v207_v45 = vperm.slane %v1233_v9, 2  ;;  %s1186_s2 = smov 96  }
  0x15   :  { %288 = vmatpush.msrb.mxu1 %v1227_v6  ;;  %948 = vmatmul.msk.f32.vlgmr.msra.gmra.mxu0 %vm92_vm3, %v65_v7  ;;  %v82_v18 = vld [vmem:[#allocation7 + $0x68] sm:$0xff]  ;;  %vm272_vm14 = vcmask 261120   ;;  %s920_s7 = sshll.u32 %s1382_s3, 4  ;;  %s1187_s8 = smov [#allocation8]   ;;  %s921_s7 = int_to_ptr.hbm [resolvable:$true] %s920_s7 }
  0x16   :  { %317 = vrot.lane.b32.xlu0 %v247_v10, %s1184_s0  ;;  %501 = vmatpush.msrb.mxu0 %v1227_v6  ;;  %s918_s9 = sshll.u32 %s1187_s8, 4  ;;  %s1188_s10 = smov 123   ;;  %s919_s9 = int_to_ptr.vmem [resolvable:$true] %s918_s9 }
  0x17   :  { %289 = vmatpush.msrb.mxu1 %v1231_v8  ;;  %955 = vmatpush.msk.msra.mxu2 %vm180_vm4, %v84_v15  ;;  %s1189_s11 = smov [#allocation9]   ;;  %s931_s15 = sshll.u32 %s1383_s4, 4  ;;  %s932_s15 = int_to_ptr.hbm [resolvable:$true] %s931_s15 }
  0x18   :  { %502 = vmatpush.msrb.mxu0 %v1231_v8  ;;  %227 = vmatpush.msra.mxu3 %v85_v17  ;;  %v79_v17 = vld [vmem:[#allocation7 + $0x50] sm:$0x3]  ;;  %s929_s12 = sshll.u32 %s1189_s11, 4  ;;  %s930_s12 = int_to_ptr.vmem [resolvable:$true] %s929_s12 }
  0x19   :  { %290 = vmatpush.msrb.mxu1 %v1238_v11  ;;  %198 = vmatpush.msra.mxu2 %v83_v16 }
  0x1a   :  { %503 = vmatpush.msrb.mxu0 %v1238_v11  ;;  %959 = vmatpush.msk.msrb.mxu3 %vm143_vm1, %v79_v17 }
  0x1b   :  { %291 = vmatpush.msrb.mxu1 %v1242_v12  ;;  %199 = vmatpush.msra.mxu2 %v82_v18  ;;  %v78_v18 = vld [vmem:[#allocation7 + $0x48] sm:$0xff] }
  0x1c   :  { %292 = vmatmul.f32.vlgmr.msrb.gmra.mxu1 %v1185_v14  ;;  %504 = vmatpush.msrb.mxu0 %v1242_v12 }
  0x1d   :  { %429 = vmatpush.msra.mxu1 %v1227_v6  ;;  %949 = vmatmul.msk.f32.gmra.mxu0 %vm92_vm3, %v66_v13 }
  0x1e   :  { %783 = vmatpush.msra.mxu0 %v1227_v6  ;;  %573 = vmatpush.msrb.mxu2 %v1227_v6 }
  0x1f   :  { %430 = vmatpush.msra.mxu1 %v1231_v8  ;;  %267 = vmatpush.msrb.mxu3 %v78_v18 }
  0x20   :  { %784 = vmatpush.msra.mxu0 %v1231_v8  ;;  %574 = vmatpush.msrb.mxu2 %v1231_v8 }
  0x21   :  { %431 = vmatpush.msra.mxu1 %v1238_v11 }
  0x22   :  { %785 = vmatpush.msra.mxu0 %v1238_v11  ;;  %575 = vmatpush.msrb.mxu2 %v1238_v11 }
  0x23   :  { %432 = vmatpush.msra.mxu1 %v1242_v12 }
  0x24   :  { %786 = vmatpush.msra.mxu0 %v1242_v12  ;;  %576 = vmatpush.msrb.mxu2 %v1242_v12 }
  0x25   :  { %711 = vmatpush.msrb.mxu1 %v1227_v6 }
  0x27   :  { %712 = vmatpush.msrb.mxu1 %v1231_v8 }
  0x29   :  { %713 = vmatpush.msrb.mxu1 %v1238_v11 }
  0x2b   :  { %714 = vmatpush.msrb.mxu1 %v1242_v12 }
  0x88   :  { %v1269_v28 = vpop.permute.xlu0 %317 }
  0x91   :  { %v164_v21 = vpop.f32.mrf.mxu1 }
  0x92   :  { %v165_v22 = vadd.f32 %v164_v21, %v138_v19  ;;  %v120_v23 = vpop.f32.mrf.mxu0 }
  0x93   :  { %v121_v25 = vadd.f32 %v120_v23, %v91_v20 }
  0x94   :  { %v168_v24 = vmin.f32 %v165_v22, 0.0  ;;  %vm167_vm6 = vcmp.gt.f32.partialorder %v165_v22, 0.0 }
  0x95   :  { %v128_v27 = vmin.f32 %v121_v25, 0.0  ;;  %vm126_vm8 = vcmp.gt.f32.partialorder %v121_v25, 0.0 }
  0x96   :  { %v169_v26 = vmul.f32 1.442695, %v168_v24 }
  0x97   :  { %v130_v29 = vmul.f32 1.442695, %v128_v27 }
  0x98   :  { %991 = vpow2.f32 %v169_v26 }
  0x99   :  { %v293_v30 = vpop.f32.mrf.mxu1  ;;  %993 = vpow2.f32 %v130_v29 }
  0x9a   :  { %v320_v31 = vadd.f32 %v1269_v28, %v293_v30  ;;  %v123_v32 = vpop.f32.mrf.mxu0 }
  0x9b   :  { %v124_v33 = vadd.f32 %v123_v32, %v91_v20 }
  0x9c   :  { %322 = vrot.lane.b32.xlu0 %v320_v31, %s1184_s0 }
  0x9d   :  { %v129_v35 = vmin.f32 %v124_v33, 0.0  ;;  %vm127_vm9 = vcmp.gt.f32.partialorder %v124_v33, 0.0 }
  0x9e   :  { %v992_v34 = vpop.eup %991 }
  0x9f   :  { %v954_v36 = vadd.f32 -1.0, %v992_v34  ;;  %v994_v37 = vpop.eup %993  ;;  %v132_v38 = vmul.f32 1.442695, %v129_v35 }
  0xa0   :  { %v950_v40 = vadd.f32 -1.0, %v994_v37 }
  0xa1   :  { %v172_v39 = vsel %vm167_vm6, %v165_v22, %v954_v36  ;;  %995 = vpow2.f32 %v132_v38 }
  0xa2   :  { %958 = vmatmul.msk.f32.vlgmr.msra.gmra.mxu3 %vm208_vm5, %v172_v39  ;;  %v136_v41 = vsel %vm126_vm8, %v121_v25, %v950_v40 }
  0xa3   :  { %956 = vmatmul.msk.f32.vlgmr.msra.gmra.mxu2 %vm173_vm7, %v136_v41  ;;  %357 = vmatpush.msra.mxu3 %v1227_v6 }
  0xa5   :  { %358 = vmatpush.msra.mxu3 %v1231_v8 }
  0xa7   :  { %v996_v42 = vpop.eup %995  ;;  %359 = vmatpush.msra.mxu3 %v1238_v11 }
  0xa8   :  { %v951_v43 = vadd.f32 -1.0, %v996_v42 }
  0xa9   :  { %360 = vmatpush.msra.mxu3 %v1242_v12 }
  0xaa   :  { %v137_v44 = vsel %vm127_vm9, %v124_v33, %v951_v43  ;;  %960 = vmatmul.msk.f32.vlgmr.msrb.gmra.mxu3 %vm139_vm2, %v1225_v4 }
  0xab   :  { %957 = vmatmul.msk.f32.gmra.mxu2 %vm173_vm7, %v137_v44  ;;  %639 = vmatpush.msrb.mxu3 %v1227_v6 }
  0xad   :  { %640 = vmatpush.msrb.mxu3 %v1231_v8 }
  0xaf   :  { %641 = vmatpush.msrb.mxu3 %v1238_v11 }
  0xb1   :  { %642 = vmatpush.msrb.mxu3 %v1242_v12 }
 0x10e   :  { %v323_v3 = vpop.permute.xlu0 %322 }
 0x125   :  { %v229_v46 = vpop.f32.mrf.mxu3 }
 0x126   :  { %v1274_v47 = vadd.f32 %v229_v46, %v207_v45  ;;  %v201_v48 = vpop.f32.mrf.mxu2 }
 0x128   :  { %v232_v49 = vadd.f32 %v1274_v47, %v201_v48  ;;  %v234_v50 = vrot.slane %v1274_v47, 6  ;;  %v237_v51 = vrot.slane %v1274_v47, 4  ;;  %v240_v52 = vrot.slane %v1274_v47, 2 }
 0x12a   :  { %v296_v53 = vadd.f32 %v293_v30, %v232_v49  ;;  %v1282_v54 = vadd.f32 %v234_v50, %v201_v48  ;;  %v1286_v55 = vadd.f32 %v237_v51, %v201_v48  ;;  %v1290_v56 = vadd.f32 %v240_v52, %v201_v48 }
 0x12c   :  { %v961_v57 = vmul.f32 -1.442695, %v296_v53 }
 0x12d   :  { %v1307_v24 = vpop.f32.mrf.mxu3 }
 0x12e   :  { %997 = vpow2.f32 %v961_v57 }
 0x134   :  { %v998_v58 = vpop.eup %997 }
 0x135   :  { %v300_v59 = vadd.f32 1.0, %v998_v58 }
 0x137   :  { %999 = vrcp.f32 %v300_v59  ;;  %v312_v63 = vand.u32 2147483648, %v300_v59  ;;  %v310_v1 = vand.u32 2147483647, %v300_v59  ;;  %vm306_vm11 = vweird.f32 %v300_v59 }
 0x139   :  { %v313_v5 = vor.u32 1.1754944e-38, %v312_v63  ;;  %vm311_vm13 = vcmp.eq.f32.partialorder %v310_v1, 8.507059e+37 }
 0x13d   :  { %v1000_v60 = vpop.eup %999 }
 0x13e   :  { %v302_v61 = vmul.f32 %v1000_v60, %v300_v59  ;;  %vm307_vm10 = vweird.f32 %v1000_v60 }
 0x13f   :  { %vm308_vm12 = vmor %vm306_vm11, %vm307_vm10 }
 0x140   :  { %v303_v62 = vsub.f32 1.0, %v302_v61 }
 0x142   :  { %v304_v0 = vmul.f32 %v1000_v60, %v303_v62 }
 0x144   :  { %v305_v2 = vadd.f32 %v1000_v60, %v304_v0 }
 0x146   :  { %v309_v7 = vsel %vm308_vm12, %v1000_v60, %v305_v2 }
 0x147   :  { %v314_v10 = vsel %vm311_vm13, %v313_v5, %v309_v7 }
 0x148   :  { %v325_v13 = vmul.f32 %v323_v3, %v314_v10  ;;  %v332_v19 = vsub.f32 1.0, %v314_v10  ;;  %v338_v4 = vmul.f32 0.0, %v314_v10 }
 0x14a   :  { %327 = vrot.lane.b32.xlu1 %v325_v13, %s1184_s0 }
 0x1bc   :  { %v328_v14 = vpop.permute.xlu1 %327 }
 0x1bd   :  { %v330_v15 = vadd.f32 %v328_v14, %v232_v49 }
 0x1bf   :  { %1001 = vtanh.f32 %v330_v15 }
 0x1c5   :  { %v1002_v16 = vpop.eup %1001 }
 0x1c6   :  { %334 = vrot.lane.b32.xlu1 %v1002_v16, %s1186_s2 }
 0x238   :  { %v335_v20 = vpop.permute.xlu1 %334 }
 0x239   :  { %v337_v21 = vmul.f32 %v335_v20, %v332_v19 }
 0x23b   :  { %v339_v22 = vadd.f32 %v338_v4, %v337_v21 }
 0x23d   :  { %341 = vrot.lane.b32.xlu2 %v339_v22, %s1186_s2  ;;  %v407_v38 = vrot.slane %v339_v22, 6 }
 0x297   :  { %v342_v23 = vpop.permute.xlu2 %341 }
 0x298   :  { %962 = vmatmul.msk.f32.vlgmr.msra.gmra.mxu3 %vm272_vm14, %v342_v23 }
 0x31b   :  { %v362_v6 = vpop.f32.mrf.mxu3 }
 0x31c   :  { %v366_v25 = vrot.slane %v362_v6, 6  ;;  %v388_v8 = vadd.f32 %v362_v6, %v1269_v28 }
 0x31e   :  { %v368_v11 = vadd.f32 %v366_v25, %v1282_v54  ;;  %v390_v12 = vrot.slane %v388_v8, 6 }
 0x320   :  { %v963_v26 = vmul.f32 -1.442695, %v368_v11  ;;  %391 = vrot.lane.b32.xlu2 %v390_v12, %s1184_s0 }
 0x322   :  { %1003 = vpow2.f32 %v963_v26 }
 0x328   :  { %v1004_v27 = vpop.eup %1003 }
 0x329   :  { %v372_v29 = vadd.f32 1.0, %v1004_v27 }
 0x32b   :  { %1005 = vrcp.f32 %v372_v29  ;;  %v384_v33 = vand.u32 2147483648, %v372_v29  ;;  %v382_v35 = vand.u32 2147483647, %v372_v29  ;;  %vm378_vm0 = vweird.f32 %v372_v29 }
 0x32d   :  { %v385_v37 = vor.u32 1.1754944e-38, %v384_v33  ;;  %vm383_vm2 = vcmp.eq.f32.partialorder %v382_v35, 8.507059e+37 }
 0x331   :  { %v1006_v30 = vpop.eup %1005 }
 0x332   :  { %v374_v31 = vmul.f32 %v1006_v30, %v372_v29  ;;  %vm379_vm15 = vweird.f32 %v1006_v30 }
 0x333   :  { %vm380_vm1 = vmor %vm378_vm0, %vm379_vm15 }
 0x334   :  { %v375_v32 = vsub.f32 1.0, %v374_v31 }
 0x336   :  { %v376_v34 = vmul.f32 %v1006_v30, %v375_v32 }
 0x338   :  { %v377_v36 = vadd.f32 %v1006_v30, %v376_v34 }
 0x33a   :  { %v381_v39 = vsel %vm380_vm1, %v1006_v30, %v377_v36 }
 0x33b   :  { %v386_v40 = vsel %vm383_vm2, %v385_v37, %v381_v39 }
 0x33c   :  { %v409_v41 = vmul.f32 %v407_v38, %v386_v40  ;;  %v401_v48 = vsub.f32 1.0, %v386_v40 }
 0x37a   :  { %v392_v42 = vpop.permute.xlu2 %391 }
 0x37b   :  { %v394_v43 = vmul.f32 %v392_v42, %v386_v40 }
 0x37d   :  { %396 = vrot.lane.b32.xlu0 %v394_v43, %s1184_s0 }
 0x3ef   :  { %v397_v44 = vpop.permute.xlu0 %396 }
 0x3f0   :  { %v399_v45 = vadd.f32 %v397_v44, %v1282_v54 }
 0x3f2   :  { %1007 = vtanh.f32 %v399_v45 }
 0x3f8   :  { %v1008_v46 = vpop.eup %1007 }
 0x3f9   :  { %403 = vrot.lane.b32.xlu1 %v1008_v46, %s1186_s2 }
 0x46b   :  { %v404_v49 = vpop.permute.xlu1 %403 }
 0x46c   :  { %v406_v53 = vmul.f32 %v404_v49, %v401_v48 }
 0x46e   :  { %v410_v57 = vadd.f32 %v409_v41, %v406_v53 }
 0x470   :  { %v412_v58 = vrot.slane %v410_v57, 2  ;;  %v479_v23 = vrot.slane %v410_v57, 6 }
 0x472   :  { %413 = vrot.lane.b32.xlu2 %v412_v58, %s1186_s2 }
 0x4cc   :  { %v414_v59 = vpop.permute.xlu2 %413 }
 0x4cd   :  { %964 = vmatmul.msk.f32.vlgmr.msra.gmra.mxu1 %vm272_vm14, %v414_v59 }
 0x54a   :  { %v434_v60 = vpop.f32.mrf.mxu1 }
 0x54b   :  { %v460_v61 = vadd.f32 %v434_v60, %v1269_v28  ;;  %v438_v54 = vrot.slane %v434_v60, 4 }
 0x54d   :  { %v462_v62 = vrot.slane %v460_v61, 4  ;;  %v440_v63 = vadd.f32 %v438_v54, %v1286_v55 }
 0x54f   :  { %463 = vrot.lane.b32.xlu0 %v462_v62, %s1184_s0  ;;  %v965_v0 = vmul.f32 -1.442695, %v440_v63 }
 0x551   :  { %1009 = vpow2.f32 %v965_v0 }
 0x557   :  { %v1010_v1 = vpop.eup %1009 }
 0x558   :  { %v444_v2 = vadd.f32 1.0, %v1010_v1  ;;  %v1333_v1 = vpop.f32.mrf.mxu2 }
 0x55a   :  { %1011 = vrcp.f32 %v444_v2  ;;  %v456_v14 = vand.u32 2147483648, %v444_v2  ;;  %vm450_vm4 = vweird.f32 %v444_v2  ;;  %v454_v15 = vand.u32 2147483647, %v444_v2 }
 0x55c   :  { %v457_v17 = vor.u32 1.1754944e-38, %v456_v14  ;;  %vm455_vm6 = vcmp.eq.f32.partialorder %v454_v15, 8.507059e+37 }
 0x560   :  { %v1012_v3 = vpop.eup %1011 }
 0x561   :  { %v446_v5 = vmul.f32 %v1012_v3, %v444_v2  ;;  %vm451_vm3 = vweird.f32 %v1012_v3 }
 0x562   :  { %vm452_vm5 = vmor %vm450_vm4, %vm451_vm3 }
 0x563   :  { %v447_v7 = vsub.f32 1.0, %v446_v5 }
 0x565   :  { %v448_v10 = vmul.f32 %v1012_v3, %v447_v7 }
 0x567   :  { %v449_v13 = vadd.f32 %v1012_v3, %v448_v10 }
 0x569   :  { %v453_v16 = vsel %vm452_vm5, %v1012_v3, %v449_v13  ;;  %v243_v3 = vadd.f32 %v1274_v47, %v1333_v1 }
 0x56a   :  { %v458_v19 = vsel %vm455_vm6, %v457_v17, %v453_v16 }
 0x56b   :  { %v473_v6 = vsub.f32 1.0, %v458_v19  ;;  %v481_v8 = vmul.f32 %v479_v23, %v458_v19 }
 0x5c1   :  { %v464_v18 = vpop.permute.xlu0 %463 }
 0x5c2   :  { %v466_v20 = vmul.f32 %v464_v18, %v458_v19 }
 0x5c4   :  { %468 = vrot.lane.b32.xlu1 %v466_v20, %s1184_s0 }
 0x636   :  { %v469_v21 = vpop.permute.xlu1 %468 }
 0x637   :  { %v471_v4 = vadd.f32 %v469_v21, %v1286_v55 }
 0x639   :  { %1013 = vtanh.f32 %v471_v4 }
 0x63f   :  { %v1014_v22 = vpop.eup %1013 }
 0x640   :  { %475 = vrot.lane.b32.xlu2 %v1014_v22, %s1186_s2 }
 0x69a   :  { %v476_v25 = vpop.permute.xlu2 %475 }
 0x69b   :  { %v478_v11 = vmul.f32 %v476_v25, %v473_v6 }
 0x69d   :  { %v482_v12 = vadd.f32 %v481_v8, %v478_v11 }
 0x69f   :  { %v484_v26 = vrot.slane %v482_v12, 4  ;;  %v551_v58 = vrot.slane %v482_v12, 6 }
 0x6a1   :  { %485 = vrot.lane.b32.xlu0 %v484_v26, %s1186_s2 }
 0x713   :  { %v486_v27 = vpop.permute.xlu0 %485 }
 0x714   :  { %966 = vmatmul.msk.f32.vlgmr.msrb.gmra.mxu0 %vm272_vm14, %v486_v27 }
 0x791   :  { %v506_v29 = vpop.f32.mrf.mxu0 }
 0x792   :  { %v532_v30 = vadd.f32 %v506_v29, %v1269_v28  ;;  %v510_v31 = vrot.slane %v506_v29, 2 }
 0x794   :  { %v534_v55 = vrot.slane %v532_v30, 2  ;;  %v512_v32 = vadd.f32 %v510_v31, %v1290_v56 }
 0x796   :  { %535 = vrot.lane.b32.xlu1 %v534_v55, %s1184_s0  ;;  %v967_v33 = vmul.f32 -1.442695, %v512_v32 }
 0x798   :  { %1015 = vpow2.f32 %v967_v33 }
 0x79e   :  { %v1016_v34 = vpop.eup %1015 }
 0x79f   :  { %v516_v35 = vadd.f32 1.0, %v1016_v34 }
 0x7a1   :  { %1017 = vrcp.f32 %v516_v35  ;;  %v528_v41 = vand.u32 2147483648, %v516_v35  ;;  %vm522_vm8 = vweird.f32 %v516_v35  ;;  %v526_v42 = vand.u32 2147483647, %v516_v35 }
 0x7a3   :  { %v529_v44 = vor.u32 1.1754944e-38, %v528_v41  ;;  %vm527_vm10 = vcmp.eq.f32.partialorder %v526_v42, 8.507059e+37 }
 0x7a7   :  { %v1018_v36 = vpop.eup %1017 }
 0x7a8   :  { %v518_v37 = vmul.f32 %v1018_v36, %v516_v35  ;;  %vm523_vm7 = vweird.f32 %v1018_v36  ;;  %v244_v35 = vadd.f32 %v234_v50, %v1333_v1 }
 0x7a9   :  { %vm524_vm9 = vmor %vm522_vm8, %vm523_vm7 }
 0x7aa   :  { %v519_v38 = vsub.f32 1.0, %v518_v37 }
 0x7ac   :  { %v520_v39 = vmul.f32 %v1018_v36, %v519_v38 }
 0x7ae   :  { %v521_v40 = vadd.f32 %v1018_v36, %v520_v39 }
 0x7b0   :  { %v525_v43 = vsel %vm524_vm9, %v1018_v36, %v521_v40 }
 0x7b1   :  { %v530_v46 = vsel %vm527_vm10, %v529_v44, %v525_v43 }
 0x7b2   :  { %v545_v59 = vsub.f32 1.0, %v530_v46  ;;  %v553_v61 = vmul.f32 %v551_v58, %v530_v46 }
 0x808   :  { %v536_v45 = vpop.permute.xlu1 %535 }
 0x809   :  { %v538_v48 = vmul.f32 %v536_v45, %v530_v46 }
 0x80b   :  { %540 = vrot.lane.b32.xlu2 %v538_v48, %s1184_s0 }
 0x865   :  { %v541_v49 = vpop.permute.xlu2 %540 }
 0x866   :  { %v543_v53 = vadd.f32 %v541_v49, %v1290_v56 }
 0x868   :  { %1019 = vtanh.f32 %v543_v53 }
 0x86e   :  { %v1020_v57 = vpop.eup %1019 }
 0x86f   :  { %547 = vrot.lane.b32.xlu0 %v1020_v57, %s1186_s2 }
 0x8e1   :  { %v548_v60 = vpop.permute.xlu0 %547 }
 0x8e2   :  { %v550_v62 = vmul.f32 %v548_v60, %v545_v59 }
 0x8e4   :  { %v554_v54 = vadd.f32 %v553_v61, %v550_v62 }
 0x8e6   :  { %v556_v63 = vrot.slane %v554_v54, 6 }
 0x8e8   :  { %557 = vrot.lane.b32.xlu1 %v556_v63, %s1186_s2 }
 0x95a   :  { %v558_v0 = vpop.permute.xlu1 %557 }
 0x95b   :  { %968 = vmatmul.msk.f32.vlgmr.msrb.gmra.mxu2 %vm272_vm14, %v558_v0 }
 0x9de   :  { %v578_v2 = vpop.f32.mrf.mxu2 }
 0x9df   :  { %v601_v56 = vadd.f32 %v578_v2, %v1269_v28  ;;  %v581_v5 = vadd.f32 %v578_v2, %v243_v3 }
 0x9e1   :  { %603 = vrot.lane.b32.xlu2 %v601_v56, %s1184_s0  ;;  %v969_v7 = vmul.f32 -1.442695, %v581_v5 }
 0x9e3   :  { %1021 = vpow2.f32 %v969_v7 }
 0x9e9   :  { %v1022_v10 = vpop.eup %1021 }
 0x9ea   :  { %v585_v13 = vadd.f32 1.0, %v1022_v10 }
 0x9ec   :  { %1023 = vrcp.f32 %v585_v13  ;;  %v597_v19 = vand.u32 2147483648, %v585_v13  ;;  %vm591_vm12 = vweird.f32 %v585_v13  ;;  %v595_v20 = vand.u32 2147483647, %v585_v13 }
 0x9ee   :  { %v598_v4 = vor.u32 1.1754944e-38, %v597_v19  ;;  %vm596_vm15 = vcmp.eq.f32.partialorder %v595_v20, 8.507059e+37 }
 0x9f2   :  { %v1024_v14 = vpop.eup %1023 }
 0x9f3   :  { %v587_v15 = vmul.f32 %v1024_v14, %v585_v13  ;;  %vm592_vm11 = vweird.f32 %v1024_v14 }
 0x9f4   :  { %vm593_vm13 = vmor %vm591_vm12, %vm592_vm11 }
 0x9f5   :  { %v588_v16 = vsub.f32 1.0, %v587_v15 }
 0x9f7   :  { %v589_v17 = vmul.f32 %v1024_v14, %v588_v16 }
 0x9f9   :  { %v590_v18 = vadd.f32 %v1024_v14, %v589_v17 }
 0x9fb   :  { %v594_v21 = vsel %vm593_vm13, %v1024_v14, %v590_v18  ;;  %v245_v14 = vadd.f32 %v237_v51, %v1333_v1  ;;  %vm876_vm13 = vcmask 130048  }
 0x9fc   :  { %v599_v23 = vsel %vm596_vm15, %v598_v4, %v594_v21 }
 0x9fd   :  { %v613_v12 = vsub.f32 1.0, %v599_v23  ;;  %v620_v27 = vmul.f32 %v599_v23, %v556_v63 }
 0xa3b   :  { %v604_v22 = vpop.permute.xlu2 %603 }
 0xa3c   :  { %v606_v6 = vmul.f32 %v604_v22, %v599_v23 }
 0xa3e   :  { %608 = vrot.lane.b32.xlu0 %v606_v6, %s1184_s0 }
 0xab0   :  { %v609_v25 = vpop.permute.xlu0 %608 }
 0xab1   :  { %v611_v8 = vadd.f32 %v609_v25, %v243_v3 }
 0xab3   :  { %1025 = vtanh.f32 %v611_v8 }
 0xab9   :  { %v1026_v11 = vpop.eup %1025 }
 0xaba   :  { %615 = vrot.lane.b32.xlu1 %v1026_v11, %s1186_s2 }
 0xb2c   :  { %v616_v26 = vpop.permute.xlu1 %615 }
 0xb2d   :  { %v618_v29 = vmul.f32 %v616_v26, %v613_v12 }
 0xb2f   :  { %v621_v30 = vadd.f32 %v620_v27, %v618_v29 }
 0xb31   :  { %623 = vrot.lane.b32.xlu2 %v621_v30, %s1186_s2  ;;  %v689_v61 = vrot.slane %v621_v30, 6 }
 0xb8b   :  { %v624_v55 = vpop.permute.xlu2 %623 }
 0xb8c   :  { %970 = vmatmul.msk.f32.vlgmr.msrb.gmra.mxu3 %vm272_vm14, %v624_v55 }
 0xc0f   :  { %v644_v31 = vpop.f32.mrf.mxu3 }
 0xc10   :  { %v670_v32 = vadd.f32 %v644_v31, %v1269_v28  ;;  %v648_v34 = vrot.slane %v644_v31, 6 }
 0xc12   :  { %v672_v33 = vrot.slane %v670_v32, 6  ;;  %v650_v36 = vadd.f32 %v648_v34, %v244_v35 }
 0xc14   :  { %673 = vrot.lane.b32.xlu0 %v672_v33, %s1184_s0  ;;  %v971_v37 = vmul.f32 -1.442695, %v650_v36 }
 0xc16   :  { %1027 = vpow2.f32 %v971_v37 }
 0xc1c   :  { %v1028_v38 = vpop.eup %1027 }
 0xc1d   :  { %v654_v39 = vadd.f32 1.0, %v1028_v38  ;;  %v246_v38 = vadd.f32 %v240_v52, %v1333_v1 }
 0xc1f   :  { %1029 = vrcp.f32 %v654_v39  ;;  %v666_v45 = vand.u32 2147483648, %v654_v39  ;;  %vm660_vm1 = vweird.f32 %v654_v39  ;;  %v664_v46 = vand.u32 2147483647, %v654_v39 }
 0xc21   :  { %v667_v49 = vor.u32 1.1754944e-38, %v666_v45  ;;  %vm665_vm3 = vcmp.eq.f32.partialorder %v664_v46, 8.507059e+37 }
 0xc25   :  { %v1030_v40 = vpop.eup %1029 }
 0xc26   :  { %v656_v41 = vmul.f32 %v1030_v40, %v654_v39  ;;  %vm661_vm0 = vweird.f32 %v1030_v40 }
 0xc27   :  { %vm662_vm2 = vmor %vm660_vm1, %vm661_vm0  ;;  %vm911_vm0 = vcmask 33792  }
 0xc28   :  { %v657_v42 = vsub.f32 1.0, %v656_v41 }
 0xc2a   :  { %v658_v43 = vmul.f32 %v1030_v40, %v657_v42 }
 0xc2c   :  { %v659_v44 = vadd.f32 %v1030_v40, %v658_v43 }
 0xc2e   :  { %v663_v48 = vsel %vm662_vm2, %v1030_v40, %v659_v44 }
 0xc2f   :  { %v668_v53 = vsel %vm665_vm3, %v667_v49, %v663_v48 }
 0xc30   :  { %v683_v62 = vsub.f32 1.0, %v668_v53  ;;  %v691_v0 = vmul.f32 %v689_v61, %v668_v53 }
 0xc86   :  { %v674_v50 = vpop.permute.xlu0 %673 }
 0xc87   :  { %v676_v57 = vmul.f32 %v674_v50, %v668_v53 }
 0xc89   :  { %678 = vrot.lane.b32.xlu1 %v676_v57, %s1184_s0 }
 0xcfb   :  { %v679_v58 = vpop.permute.xlu1 %678 }
 0xcfc   :  { %v681_v59 = vadd.f32 %v679_v58, %v244_v35 }
 0xcfe   :  { %1031 = vtanh.f32 %v681_v59 }
 0xd04   :  { %v1032_v60 = vpop.eup %1031 }
 0xd05   :  { %685 = vrot.lane.b32.xlu2 %v1032_v60, %s1186_s2 }
 0xd5f   :  { %v686_v54 = vpop.permute.xlu2 %685 }
 0xd60   :  { %v688_v63 = vmul.f32 %v686_v54, %v683_v62 }
 0xd62   :  { %v692_v2 = vadd.f32 %v691_v0, %v688_v63  ;;  %v77_v0 = vld [vmem:[#allocation7 + $0x40] sm:$0xff] }
 0xd63   :  { %861 = vmatpush.msra.mxu2 %v77_v0 }
 0xd64   :  { %v694_v56 = vrot.slane %v692_v2, 2  ;;  %v761_v30 = vrot.slane %v692_v2, 6  ;;  %v76_v2 = vld [vmem:[#allocation7 + $0x38] sm:$0xff] }
 0xd65   :  { %862 = vmatpush.msra.mxu2 %v76_v2 }
 0xd66   :  { %695 = vrot.lane.b32.xlu0 %v694_v56, %s1186_s2  ;;  %v75_v56 = vld [vmem:[#allocation7 + $0x30] sm:$0xff] }
 0xd67   :  { %863 = vmatpush.msra.mxu2 %v75_v56 }
 0xdd8   :  { %v696_v3 = vpop.permute.xlu0 %695 }
 0xdd9   :  { %972 = vmatmul.msk.f32.vlgmr.msrb.gmra.mxu1 %vm272_vm14, %v696_v3  ;;  %v74_v3 = vld [vmem:[#allocation7 + $0x28] sm:$0xff] }
 0xdda   :  { %864 = vmatpush.msra.mxu2 %v74_v3 }
 0xe56   :  { %v716_v5 = vpop.f32.mrf.mxu1 }
 0xe57   :  { %v742_v7 = vadd.f32 %v716_v5, %v1269_v28  ;;  %v720_v13 = vrot.slane %v716_v5, 4 }
 0xe59   :  { %v744_v10 = vrot.slane %v742_v7, 4  ;;  %v722_v15 = vadd.f32 %v720_v13, %v245_v14 }
 0xe5b   :  { %745 = vrot.lane.b32.xlu1 %v744_v10, %s1184_s0  ;;  %v973_v16 = vmul.f32 -1.442695, %v722_v15 }
 0xe5d   :  { %1033 = vpow2.f32 %v973_v16 }
 0xe63   :  { %v1034_v17 = vpop.eup %1033 }
 0xe64   :  { %v726_v18 = vadd.f32 1.0, %v1034_v17 }
 0xe66   :  { %1035 = vrcp.f32 %v726_v18  ;;  %v738_v23 = vand.u32 2147483648, %v726_v18  ;;  %vm732_vm5 = vweird.f32 %v726_v18  ;;  %v736_v6 = vand.u32 2147483647, %v726_v18 }
 0xe68   :  { %v739_v8 = vor.u32 1.1754944e-38, %v738_v23  ;;  %vm737_vm7 = vcmp.eq.f32.partialorder %v736_v6, 8.507059e+37 }
 0xe6c   :  { %v1036_v19 = vpop.eup %1035 }
 0xe6d   :  { %v728_v20 = vmul.f32 %v1036_v19, %v726_v18  ;;  %vm733_vm4 = vweird.f32 %v1036_v19 }
 0xe6e   :  { %vm734_vm6 = vmor %vm732_vm5, %vm733_vm4 }
 0xe6f   :  { %v729_v21 = vsub.f32 1.0, %v728_v20 }
 0xe71   :  { %v730_v4 = vmul.f32 %v1036_v19, %v729_v21  ;;  %v81_v21 = vld [vmem:[#allocation7 + $0x60] sm:$0xff] }
 0xe72   :  { %894 = vmatpush.msra.mxu3 %v81_v21 }
 0xe73   :  { %v731_v22 = vadd.f32 %v1036_v19, %v730_v4  ;;  %v80_v4 = vld [vmem:[#allocation7 + $0x58] sm:$0xff] }
 0xe74   :  { %895 = vmatpush.msra.mxu3 %v80_v4 }
 0xe75   :  { %v735_v25 = vsel %vm734_vm6, %v1036_v19, %v731_v22  ;;  %v248_v22 = vperm.slane %v1233_v9, 4 }
 0xe76   :  { %v740_v11 = vsel %vm737_vm7, %v739_v8, %v735_v25 }
 0xe77   :  { %v755_v55 = vsub.f32 1.0, %v740_v11  ;;  %v763_v32 = vmul.f32 %v761_v30, %v740_v11  ;;  %v270_v23 = vadd.f32 %v1307_v24, %v248_v22 }
 0xecd   :  { %v746_v51 = vpop.permute.xlu1 %745 }
 0xece   :  { %v748_v12 = vmul.f32 %v746_v51, %v740_v11 }
 0xed0   :  { %750 = vrot.lane.b32.xlu2 %v748_v12, %s1184_s0 }
 0xf2a   :  { %v751_v26 = vpop.permute.xlu2 %750 }
 0xf2b   :  { %v753_v27 = vadd.f32 %v751_v26, %v245_v14 }
 0xf2d   :  { %1037 = vtanh.f32 %v753_v27  ;;  %v875_v27 = vperm.slane %v1233_v9, 5  ;;  %v68_v9 = vld [vmem:[#allocation5 + $0x8] sm:$0x3] }
 0xf33   :  { %v1038_v29 = vpop.eup %1037 }
 0xf34   :  { %757 = vrot.lane.b32.xlu0 %v1038_v29, %s1186_s2 }
 0xfa6   :  { %v758_v31 = vpop.permute.xlu0 %757 }
 0xfa7   :  { %v760_v33 = vmul.f32 %v758_v31, %v755_v55 }
 0xfa9   :  { %v764_v34 = vadd.f32 %v763_v32, %v760_v33 }
 0xfab   :  { %v766_v35 = vrot.slane %v764_v34, 4  ;;  %v833_v1 = vrot.slane %v764_v34, 6 }
 0xfad   :  { %767 = vrot.lane.b32.xlu1 %v766_v35, %s1186_s2 }
0x101f   :  { %v768_v36 = vpop.permute.xlu1 %767 }
0x1020   :  { %974 = vmatmul.msk.f32.vlgmr.msra.gmra.mxu0 %vm272_vm14, %v768_v36 }
0x109d   :  { %v788_v37 = vpop.f32.mrf.mxu0 }
0x109e   :  { %v792_v39 = vrot.slane %v788_v37, 2  ;;  %v814_v40 = vadd.f32 %v788_v37, %v1269_v28 }
0x10a0   :  { %v794_v41 = vadd.f32 %v792_v39, %v246_v38  ;;  %v816_v42 = vrot.slane %v814_v40, 2 }
0x10a2   :  { %v975_v43 = vmul.f32 -1.442695, %v794_v41  ;;  %817 = vrot.lane.b32.xlu2 %v816_v42, %s1184_s0 }
0x10a4   :  { %1039 = vpow2.f32 %v975_v43 }
0x10aa   :  { %v1040_v44 = vpop.eup %1039 }
0x10ab   :  { %v798_v45 = vadd.f32 1.0, %v1040_v44 }
0x10ad   :  { %1041 = vrcp.f32 %v798_v45  ;;  %v810_v50 = vand.u32 2147483648, %v798_v45  ;;  %v808_v47 = vand.u32 2147483647, %v798_v45  ;;  %vm804_vm9 = vweird.f32 %v798_v45 }
0x10af   :  { %v811_v28 = vor.u32 1.1754944e-38, %v810_v50  ;;  %vm809_vm11 = vcmp.eq.f32.partialorder %v808_v47, 8.507059e+37 }
0x10b3   :  { %v1042_v46 = vpop.eup %1041 }
0x10b4   :  { %v800_v48 = vmul.f32 %v1042_v46, %v798_v45  ;;  %vm805_vm8 = vweird.f32 %v1042_v46 }
0x10b5   :  { %vm806_vm10 = vmor %vm804_vm9, %vm805_vm8 }
0x10b6   :  { %v801_v49 = vsub.f32 1.0, %v800_v48 }
0x10b8   :  { %v802_v53 = vmul.f32 %v1042_v46, %v801_v49 }
0x10ba   :  { %v803_v52 = vadd.f32 %v1042_v46, %v802_v53 }
0x10bc   :  { %v807_v57 = vsel %vm806_vm10, %v1042_v46, %v803_v52 }
0x10bd   :  { %v812_v58 = vsel %vm809_vm11, %v811_v28, %v807_v57 }
0x10be   :  { %v835_v59 = vmul.f32 %v833_v1, %v812_v58  ;;  %v827_v5 = vsub.f32 1.0, %v812_v58 }
0x10fc   :  { %v818_v60 = vpop.permute.xlu2 %817 }
0x10fd   :  { %v820_v61 = vmul.f32 %v818_v60, %v812_v58 }
0x10ff   :  { %822 = vrot.lane.b32.xlu0 %v820_v61, %s1184_s0 }
0x1171   :  { %v823_v62 = vpop.permute.xlu0 %822 }
0x1172   :  { %v825_v54 = vadd.f32 %v823_v62, %v246_v38 }
0x1174   :  { %1043 = vtanh.f32 %v825_v54 }
0x117a   :  { %v1044_v63 = vpop.eup %1043 }
0x117b   :  { %829 = vrot.lane.b32.xlu1 %v1044_v63, %s1186_s2 }
0x11ed   :  { %v830_v7 = vpop.permute.xlu1 %829 }
0x11ee   :  { %v832_v10 = vmul.f32 %v830_v7, %v827_v5 }
0x11f0   :  { %v836_v13 = vadd.f32 %v835_v59, %v832_v10 }
0x11f2   :  { %v838_v14 = vmin.f32 %v836_v13, 0.0  ;;  %vm837_vm12 = vcmp.gt.f32.partialorder %v836_v13, 0.0 }
0x11f4   :  { %v839_v15 = vmul.f32 1.442695, %v838_v14 }
0x11f6   :  { %1045 = vpow2.f32 %v839_v15 }
0x11fc   :  { %v1046_v16 = vpop.eup %1045 }
0x11fd   :  { %v976_v17 = vadd.f32 -1.0, %v1046_v16 }
0x11ff   :  { %v842_v18 = vsel %vm837_vm12, %v836_v13, %v976_v17 }
0x1200   :  { %v844_v19 = vrot.slane %v842_v18, 6 }
0x1202   :  { %845 = vrot.lane.b32.xlu2 %v844_v19, %s1186_s2 }
0x125c   :  { %v846_v20 = vpop.permute.xlu2 %845 }
0x125d   :  { %977 = vmatmul.msk.f32.vlgmr.msra.gmra.mxu2 %vm272_vm14, %v846_v20  ;;  %vm909_vm14 = vcmask 74752  }
0x12e0   :  { %v866_v6 = vpop.f32.mrf.mxu2 }
0x12e1   :  { %v867_v25 = vadd.f32 %v866_v6, %v270_v23 }
0x12e3   :  { %v870_v8 = vmin.f32 %v867_v25, 0.0  ;;  %vm869_vm15 = vcmp.gt.f32.partialorder %v867_v25, 0.0 }
0x12e5   :  { %v871_v51 = vmul.f32 1.442695, %v870_v8 }
0x12e7   :  { %1047 = vpow2.f32 %v871_v51 }
0x12ed   :  { %v1048_v11 = vpop.eup %1047 }
0x12ee   :  { %v978_v12 = vadd.f32 -1.0, %v1048_v11 }
0x12f0   :  { %v874_v26 = vsel %vm869_vm15, %v867_v25, %v978_v12 }
0x12f1   :  { %979 = vmatmul.msk.f32.vlgmr.msra.gmra.mxu3 %vm876_vm13, %v874_v26 }
0x1374   :  { %v897_v29 = vpop.f32.mrf.mxu3 }
0x1375   :  { %v898_v30 = vadd.f32 %v897_v29, %v875_v27 }
0x1377   :  { %v900_v55 = vmul.f32 0.5, %v898_v30  ;;  %910 = vst.msk [vmem:[#allocation8] sm:$0x3] %vm909_vm14, %v898_v30 }
0x1378   :  { %923 = dma.vmem_to_hbm [thread:$0]  %s919_s9, 32, %s921_s7, [#allocation4]  }
0x1379   :  { %v901_v24 = vmul.f32 1.442695, %v900_v55 }
0x137b   :  { %1049 = vpow2.f32 %v901_v24 }
0x1381   :  { %v1050_v31 = vpop.eup %1049 }
0x1382   :  { %904 = vrot.lane.b32.xlu0 %v1050_v31, %s1188_s10 }
0x13f4   :  { %v905_v32 = vpop.permute.xlu0 %904 }
0x13f5   :  { %v907_v33 = vmul.f32 %v905_v32, %v68_v9 }
0x13f7   :  { %v908_v34 = vadd.f32 %v907_v33, %v898_v30 }
0x13f9   :  { %912 = vst.msk [vmem:[#allocation9] sm:$0x3] %vm911_vm0, %v908_v34 }
0x13fa   :  { %934 = dma.vmem_to_hbm [thread:$0]  %s930_s12, 32, %s932_s15, [#allocation10]  }
0x13fb   :  { %1175 = dma.done.wait [#allocation4], 32  }
0x13fc   :  { %1176 = vsyncadd [#allocation4], 4294967264 }
0x13fd   :  { %1177 = dma.done.wait [#allocation10], 32  }
0x13fe   :  { %1178 = vsyncadd [#allocation10], 4294967264 }
0x13ff   :  { %943 = vsyncpa [#allocation3], 1 }
0x1400   :  { %944 = vsyncpa [#allocation6], 1 }
0x1401   :  { %945 = vsyncpa [#allocation4], 1 }
0x1402   :  { %946 = vsyncpa [#allocation10], 1 }

</bundles_post_ra>
